<compile_context>
chip_gen: v6e
topology: v6e:2x2x1
jax: 0.10.0
libtpu: 0.0.40
codegen_flags: <defaults>
</compile_context>

<pallas_src>
import jax
import jax.numpy as jnp
from jax.experimental import pallas as pl
from jax.experimental.pallas import tpu as pltpu

EPS = 1e-5   # nn.BatchNorm2d default eps


# ------------------------------ Pallas kernels ------------------------------ #

def _fused_conv_acc(xp_ref, w_ref):
    """Fused ConvT(2x2,s=2) + Conv(3x3,p=1) for one image.

    xp_ref: [1, H+2, W+2, Cin]  zero-padded NHWC input image
    w_ref : [9, Cin, 4*Cout]    composed tap weights (tap = padded row/col shift)
    returns acc: [H*W, 4*Cout] f32 with
        acc[i*W + j, (2a+b)*Cout + o] = z[o, 2i+a, 2j+b]
    """
    _, Hp, Wp, Cin = xp_ref.shape
    H, W = Hp - 2, Wp - 2
    acc = None
    for t in range(9):                      # static unrolled taps
        r, s = t // 3, t % 3
        patch = xp_ref[:, r:r + H, s:s + W, :].reshape(H * W, Cin)
        d = jnp.dot(patch, w_ref[t], preferred_element_type=jnp.float32)
        acc = d if acc is None else acc + d
    return acc


def stats_kernel(xp_ref, w_ref, stats_ref):
    # stats_ref: [1, 2, Cout]  (row 0: sum, row 1: sum of squares) per image
    acc = _fused_conv_acc(xp_ref, w_ref)
    cout = stats_ref.shape[-1]
    c4 = acc.shape[-1]
    nrep = c4 // cout
    cs32 = jnp.sum(acc, axis=0, keepdims=True)          # (1, 4*Cout)
    cq32 = jnp.sum(acc * acc, axis=0, keepdims=True)    # (1, 4*Cout)
    cs = sum(cs32[:, k * cout:(k + 1) * cout] for k in range(nrep))
    cq = sum(cq32[:, k * cout:(k + 1) * cout] for k in range(nrep))
    stats_ref[...] = jnp.concatenate([cs, cq], axis=0).reshape(1, 2, cout)


def apply_kernel(xp_ref, w_ref, shift_ref, o_ref):
    # w_ref already has the BN scale folded into its columns.
    # shift_ref: [1, LANE]  per-column BN shift (pre-tiled to lane width)
    # o_ref    : [1, MPACK, LANE]  lane-dense packed output
    acc = _fused_conv_acc(xp_ref, w_ref)
    _, mpack, lane = o_ref.shape
    y = acc.reshape(mpack, lane) + shift_ref[...]
    o_ref[...] = jnp.maximum(y, 0.0).reshape(1, mpack, lane)


# ----------------------------- weight composition ---------------------------- #

def _compose_weights(wT, wC):
    """Compose ConvTranspose2d(k=2,s=2) and Conv2d(3x3,p=1) weights.

    wT: [Cin, MID, 2, 2]  (PyTorch ConvTranspose2d layout: in, out, kh, kw)
    wC: [Cout, MID, 3, 3] (PyTorch Conv2d layout: out, in, kh, kw)
    Returns W9: [9, Cin, 4*Cout] such that, with xpad the 1-zero-padded input,
        z[o, 2i+a, 2j+b] = sum_{r,s,c} xpad[c, i+r, j+s] * W9[3r+s, c, (2a+b)*Cout+o]
    """
    Cin = wT.shape[0]
    Cout = wC.shape[0]
    # Wc[a][b][di][dj]: [Cin, Cout] fused 2x2-window weight for sub-pixel (a,b)
    Wc = [[[[jnp.zeros((Cin, Cout), jnp.float32) for _ in range(2)]
            for _ in range(2)] for _ in range(2)] for _ in range(2)]
    for a in range(2):
        for b in range(2):
            for u in range(3):
                for v in range(3):
                    t, s = a + u - 1, b + v - 1
                    di, dj = (t // 2) + 1 - a, (s // 2) + 1 - b
                    al, be = t % 2, s % 2
                    contrib = jnp.einsum('cm,om->co',
                                         wT[:, :, al, be], wC[:, :, u, v])
                    Wc[a][b][di][dj] = Wc[a][b][di][dj] + contrib
    taps = []
    for r in range(3):
        for s in range(3):
            cols = []
            for a in range(2):
                for b in range(2):
                    di, dj = r - a, s - b
                    if 0 <= di <= 1 and 0 <= dj <= 1:
                        cols.append(Wc[a][b][di][dj])
                    else:
                        cols.append(jnp.zeros((Cin, Cout), jnp.float32))
            taps.append(jnp.concatenate(cols, axis=1))   # [Cin, 4*Cout]
    return jnp.stack(taps, axis=0)                        # [9, Cin, 4*Cout]


# ---------------------------------- wrapper ---------------------------------- #

def up_layer(x_nchw, wT, wC, gamma, beta):
    """x: [N, Cin, H, W] -> [N, Cout, 2H, 2W]  (NCHW, training-mode BN)."""
    N, Cin, H, W = x_nchw.shape
    Cout = wC.shape[0]
    C4 = 4 * Cout
    H2, W2 = 2 * H, 2 * W
    Hp, Wp = H + 2, W + 2

    # Only small low-res glue: NCHW -> NHWC + zero pad of the Cin-channel input.
    xp = jnp.pad(jnp.transpose(x_nchw, (0, 2, 3, 1)),
                 ((0, 0), (1, 1), (1, 1), (0, 0)))
    w9 = _compose_weights(wT, wC)

    # Lane-dense packing of the per-image (pixel, a, b, Cout) output columns.
    if (H * W * C4) % 128 == 0 and 128 % C4 == 0:
        lane = 128
    else:
        lane = C4
    mpack = (H * W * C4) // lane

    cparams = pltpu.CompilerParams(
        dimension_semantics=("parallel",),
        vmem_limit_bytes=32 * 1024 * 1024)

    # ---- pass A: per-image channel sum / sumsq of the fused conv output ----
    stats = pl.pallas_call(
        stats_kernel,
        out_shape=jax.ShapeDtypeStruct((N, 2, Cout), jnp.float32),
        grid_spec=pltpu.PrefetchScalarGridSpec(
            num_scalar_prefetch=0,
            grid=(N,),
            in_specs=[pl.BlockSpec((1, Hp, Wp, Cin), lambda n: (n, 0, 0, 0)),
                      pl.BlockSpec((9, Cin, C4), lambda n: (0, 0, 0))],
            out_specs=pl.BlockSpec((1, 2, Cout), lambda n: (n, 0, 0))),
        compiler_params=cparams,
    )(xp, w9)

    # BatchNorm batch statistics -> per-channel affine (tiny, done in XLA).
    # TODO(synk): BatchNorm2d running_mean/running_var buffers are not
    # tracked/updated here (training-mode batch statistics only).
    count = jnp.float32(N * H2 * W2)
    mean = jnp.sum(stats[:, 0, :], axis=0) / count
    var = jnp.sum(stats[:, 1, :], axis=0) / count - mean * mean
    scale = gamma * jax.lax.rsqrt(var + EPS)
    shift = beta - mean * scale

    # Fold the BN scale into the composed weights (per packed column (a,b,o));
    # pass B's epilogue is then just add-shift + ReLU.
    w9b = w9 * jnp.tile(scale, 4)[None, None, :]
    shift_t = jnp.tile(shift.reshape(1, Cout), (1, lane // Cout))

    # ---- pass B: recompute fused conv (scale folded), + shift, ReLU, store ----
    out_packed = pl.pallas_call(
        apply_kernel,
        out_shape=jax.ShapeDtypeStruct((N, mpack, lane), jnp.float32),
        grid_spec=pltpu.PrefetchScalarGridSpec(
            num_scalar_prefetch=0,
            grid=(N,),
            in_specs=[pl.BlockSpec((1, Hp, Wp, Cin), lambda n: (n, 0, 0, 0)),
                      pl.BlockSpec((9, Cin, C4), lambda n: (0, 0, 0)),
                      pl.BlockSpec((1, lane), lambda n: (0, 0))],
            out_specs=pl.BlockSpec((1, mpack, lane), lambda n: (n, 0, 0))),
        compiler_params=cparams,
    )(xp, w9b, shift_t)

    # Packed flat order per image is (i, j, a, b, o): one transpose -> NCHW.
    out = out_packed.reshape(N, H, W, 2, 2, Cout)
    out = jnp.transpose(out, (0, 5, 1, 3, 2, 4)).reshape(N, Cout, H2, W2)
    return out


# ------------------------------ pure-JAX reference --------------------------- #

def ref_up_layer(x_nchw, wT, wC, gamma, beta):
    N, Cin, H, W = x_nchw.shape
    mid = wT.shape[1]
    x = jnp.transpose(x_nchw, (0, 2, 3, 1))
    t = jnp.einsum('nijc,cmab->nijabm', x, wT)                       # convT
    y = jnp.transpose(t, (0, 1, 3, 2, 4, 5)).reshape(N, 2 * H, 2 * W, mid)
    z = jax.lax.conv_general_dilated(
        y, jnp.transpose(wC, (2, 3, 1, 0)), window_strides=(1, 1),
        padding='SAME', dimension_numbers=('NHWC', 'HWIO', 'NHWC'))
    mean = jnp.mean(z, axis=(0, 1, 2))
    var = jnp.mean((z - mean) ** 2, axis=(0, 1, 2))
    zn = (z - mean) * jax.lax.rsqrt(var + EPS) * gamma + beta
    return jnp.transpose(jnp.maximum(zn, 0.0), (0, 3, 1, 2))


# ------------------------------------ main ------------------------------------ #

if __name__ == "__main__":
    key = jax.random.PRNGKey(0)
    k_x, k_wT, k_wC, k_g, k_b = jax.random.split(key, 5)

    N, Cin, H, W = 2, 4, 16, 16
    MID, Cout = 32, 8

    x = jax.random.normal(k_x, (N, Cin, H, W), jnp.float32)
    # ConvTranspose2d weight layout: [in_channels, out_channels, kH, kW]
    wT = 0.1 * jax.random.normal(k_wT, (Cin, MID, 2, 2), jnp.float32)
    # Conv2d weight layout: [out_channels, in_channels, kH, kW]
    wC = 0.1 * jax.random.normal(k_wC, (Cout, MID, 3, 3), jnp.float32)
    gamma = 1.0 + 0.1 * jax.random.normal(k_g, (Cout,), jnp.float32)
    beta = 0.1 * jax.random.normal(k_b, (Cout,), jnp.float32)

    out = jax.block_until_ready(up_layer(x, wT, wC, gamma, beta))
    ref = jax.block_until_ready(ref_up_layer(x, wT, wC, gamma, beta))

    assert out.shape == (N, Cout, 2 * H, 2 * W), out.shape
    assert jnp.allclose(out, ref, atol=1e-3, rtol=1e-3), \
        float(jnp.max(jnp.abs(out - ref)))

    print("KERNEL_OK")
</pallas_src>

<mosaic_0001>
module attributes {stable_mosaic.version = 11 : i64} {
  func.func @stats_kernel(%arg0: i32, %arg1: memref<1x18x18x4xf32, #tpu.memory_space<vmem>>, %arg2: memref<9x4x32xf32, #tpu.memory_space<vmem>>, %arg3: memref<1x2x8xf32, #tpu.memory_space<vmem>>) attributes {dimension_semantics = [#tpu.dimension_semantics<parallel>], iteration_bounds = array<i64: 2>, scalar_prefetch = 0 : i64, scratch_operands = 0 : i64, tpu.core_type = #tpu.core_type<tc>, window_params = [{transform_indices = @transform_0, window_bounds = array<i64: 1, 18, 18, 4>}, {pipeline_mode = #tpu.pipeline_mode<synchronous>, transform_indices = @transform_1, window_bounds = array<i64: 9, 4, 32>}, {transform_indices = @transform_2, window_bounds = array<i64: 1, 2, 8>}]} {
    %c0 = arith.constant 0 : index
    %c0_0 = arith.constant 0 : index
    %c0_1 = arith.constant 0 : index
    %c0_2 = arith.constant 0 : index
    %0 = vector.load %arg1[%c0, %c0_0, %c0_1, %c0_2] : memref<1x18x18x4xf32, #tpu.memory_space<vmem>>, vector<1x16x16x4xf32>
    %1 = vector.shape_cast %0 : vector<1x16x16x4xf32> to vector<256x4xf32>
    %c0_3 = arith.constant 0 : index
    %c0_4 = arith.constant 0 : index
    %c0_5 = arith.constant 0 : index
    %2 = vector.load %arg2[%c0_3, %c0_4, %c0_5] : memref<9x4x32xf32, #tpu.memory_space<vmem>>, vector<1x4x32xf32>
    %3 = vector.shape_cast %2 : vector<1x4x32xf32> to vector<4x32xf32>
    %cst = arith.constant dense<0.000000e+00> : vector<256x32xf32>
    %4 = tpu.matmul %1, %3, %cst {dimension_numbers = #tpu.dot_dimension_numbers<[1], [0], [0], [1], [0, 0, 1, 1], [], []>} : vector<256x4xf32>, vector<4x32xf32>, vector<256x32xf32> -> vector<256x32xf32>
    %c0_6 = arith.constant 0 : index
    %c0_7 = arith.constant 0 : index
    %c1 = arith.constant 1 : index
    %c0_8 = arith.constant 0 : index
    %5 = vector.load %arg1[%c0_6, %c0_7, %c1, %c0_8] : memref<1x18x18x4xf32, #tpu.memory_space<vmem>>, vector<1x16x16x4xf32>
    %6 = vector.shape_cast %5 : vector<1x16x16x4xf32> to vector<256x4xf32>
    %c1_9 = arith.constant 1 : index
    %c0_10 = arith.constant 0 : index
    %c0_11 = arith.constant 0 : index
    %7 = vector.load %arg2[%c1_9, %c0_10, %c0_11] : memref<9x4x32xf32, #tpu.memory_space<vmem>>, vector<1x4x32xf32>
    %8 = vector.shape_cast %7 : vector<1x4x32xf32> to vector<4x32xf32>
    %cst_12 = arith.constant dense<0.000000e+00> : vector<256x32xf32>
    %9 = tpu.matmul %6, %8, %cst_12 {dimension_numbers = #tpu.dot_dimension_numbers<[1], [0], [0], [1], [0, 0, 1, 1], [], []>} : vector<256x4xf32>, vector<4x32xf32>, vector<256x32xf32> -> vector<256x32xf32>
    %10 = arith.addf %4, %9 : vector<256x32xf32>
    %c0_13 = arith.constant 0 : index
    %c0_14 = arith.constant 0 : index
    %c2 = arith.constant 2 : index
    %c0_15 = arith.constant 0 : index
    %11 = vector.load %arg1[%c0_13, %c0_14, %c2, %c0_15] : memref<1x18x18x4xf32, #tpu.memory_space<vmem>>, vector<1x16x16x4xf32>
    %12 = vector.shape_cast %11 : vector<1x16x16x4xf32> to vector<256x4xf32>
    %c2_16 = arith.constant 2 : index
    %c0_17 = arith.constant 0 : index
    %c0_18 = arith.constant 0 : index
    %13 = vector.load %arg2[%c2_16, %c0_17, %c0_18] : memref<9x4x32xf32, #tpu.memory_space<vmem>>, vector<1x4x32xf32>
    %14 = vector.shape_cast %13 : vector<1x4x32xf32> to vector<4x32xf32>
    %cst_19 = arith.constant dense<0.000000e+00> : vector<256x32xf32>
    %15 = tpu.matmul %12, %14, %cst_19 {dimension_numbers = #tpu.dot_dimension_numbers<[1], [0], [0], [1], [0, 0, 1, 1], [], []>} : vector<256x4xf32>, vector<4x32xf32>, vector<256x32xf32> -> vector<256x32xf32>
    %16 = arith.addf %10, %15 : vector<256x32xf32>
    %c0_20 = arith.constant 0 : index
    %c1_21 = arith.constant 1 : index
    %c0_22 = arith.constant 0 : index
    %c0_23 = arith.constant 0 : index
    %17 = vector.load %arg1[%c0_20, %c1_21, %c0_22, %c0_23] : memref<1x18x18x4xf32, #tpu.memory_space<vmem>>, vector<1x16x16x4xf32>
    %18 = vector.shape_cast %17 : vector<1x16x16x4xf32> to vector<256x4xf32>
    %c3 = arith.constant 3 : index
    %c0_24 = arith.constant 0 : index
    %c0_25 = arith.constant 0 : index
    %19 = vector.load %arg2[%c3, %c0_24, %c0_25] : memref<9x4x32xf32, #tpu.memory_space<vmem>>, vector<1x4x32xf32>
    %20 = vector.shape_cast %19 : vector<1x4x32xf32> to vector<4x32xf32>
    %cst_26 = arith.constant dense<0.000000e+00> : vector<256x32xf32>
    %21 = tpu.matmul %18, %20, %cst_26 {dimension_numbers = #tpu.dot_dimension_numbers<[1], [0], [0], [1], [0, 0, 1, 1], [], []>} : vector<256x4xf32>, vector<4x32xf32>, vector<256x32xf32> -> vector<256x32xf32>
    %22 = arith.addf %16, %21 : vector<256x32xf32>
    %c0_27 = arith.constant 0 : index
    %c1_28 = arith.constant 1 : index
    %c1_29 = arith.constant 1 : index
    %c0_30 = arith.constant 0 : index
    %23 = vector.load %arg1[%c0_27, %c1_28, %c1_29, %c0_30] : memref<1x18x18x4xf32, #tpu.memory_space<vmem>>, vector<1x16x16x4xf32>
    %24 = vector.shape_cast %23 : vector<1x16x16x4xf32> to vector<256x4xf32>
    %c4 = arith.constant 4 : index
    %c0_31 = arith.constant 0 : index
    %c0_32 = arith.constant 0 : index
    %25 = vector.load %arg2[%c4, %c0_31, %c0_32] : memref<9x4x32xf32, #tpu.memory_space<vmem>>, vector<1x4x32xf32>
    %26 = vector.shape_cast %25 : vector<1x4x32xf32> to vector<4x32xf32>
    %cst_33 = arith.constant dense<0.000000e+00> : vector<256x32xf32>
    %27 = tpu.matmul %24, %26, %cst_33 {dimension_numbers = #tpu.dot_dimension_numbers<[1], [0], [0], [1], [0, 0, 1, 1], [], []>} : vector<256x4xf32>, vector<4x32xf32>, vector<256x32xf32> -> vector<256x32xf32>
    %28 = arith.addf %22, %27 : vector<256x32xf32>
    %c0_34 = arith.constant 0 : index
    %c1_35 = arith.constant 1 : index
    %c2_36 = arith.constant 2 : index
    %c0_37 = arith.constant 0 : index
    %29 = vector.load %arg1[%c0_34, %c1_35, %c2_36, %c0_37] : memref<1x18x18x4xf32, #tpu.memory_space<vmem>>, vector<1x16x16x4xf32>
    %30 = vector.shape_cast %29 : vector<1x16x16x4xf32> to vector<256x4xf32>
    %c5 = arith.constant 5 : index
    %c0_38 = arith.constant 0 : index
    %c0_39 = arith.constant 0 : index
    %31 = vector.load %arg2[%c5, %c0_38, %c0_39] : memref<9x4x32xf32, #tpu.memory_space<vmem>>, vector<1x4x32xf32>
    %32 = vector.shape_cast %31 : vector<1x4x32xf32> to vector<4x32xf32>
    %cst_40 = arith.constant dense<0.000000e+00> : vector<256x32xf32>
    %33 = tpu.matmul %30, %32, %cst_40 {dimension_numbers = #tpu.dot_dimension_numbers<[1], [0], [0], [1], [0, 0, 1, 1], [], []>} : vector<256x4xf32>, vector<4x32xf32>, vector<256x32xf32> -> vector<256x32xf32>
    %34 = arith.addf %28, %33 : vector<256x32xf32>
    %c0_41 = arith.constant 0 : index
    %c2_42 = arith.constant 2 : index
    %c0_43 = arith.constant 0 : index
    %c0_44 = arith.constant 0 : index
    %35 = vector.load %arg1[%c0_41, %c2_42, %c0_43, %c0_44] : memref<1x18x18x4xf32, #tpu.memory_space<vmem>>, vector<1x16x16x4xf32>
    %36 = vector.shape_cast %35 : vector<1x16x16x4xf32> to vector<256x4xf32>
    %c6 = arith.constant 6 : index
    %c0_45 = arith.constant 0 : index
    %c0_46 = arith.constant 0 : index
    %37 = vector.load %arg2[%c6, %c0_45, %c0_46] : memref<9x4x32xf32, #tpu.memory_space<vmem>>, vector<1x4x32xf32>
    %38 = vector.shape_cast %37 : vector<1x4x32xf32> to vector<4x32xf32>
    %cst_47 = arith.constant dense<0.000000e+00> : vector<256x32xf32>
    %39 = tpu.matmul %36, %38, %cst_47 {dimension_numbers = #tpu.dot_dimension_numbers<[1], [0], [0], [1], [0, 0, 1, 1], [], []>} : vector<256x4xf32>, vector<4x32xf32>, vector<256x32xf32> -> vector<256x32xf32>
    %40 = arith.addf %34, %39 : vector<256x32xf32>
    %c0_48 = arith.constant 0 : index
    %c2_49 = arith.constant 2 : index
    %c1_50 = arith.constant 1 : index
    %c0_51 = arith.constant 0 : index
    %41 = vector.load %arg1[%c0_48, %c2_49, %c1_50, %c0_51] : memref<1x18x18x4xf32, #tpu.memory_space<vmem>>, vector<1x16x16x4xf32>
    %42 = vector.shape_cast %41 : vector<1x16x16x4xf32> to vector<256x4xf32>
    %c7 = arith.constant 7 : index
    %c0_52 = arith.constant 0 : index
    %c0_53 = arith.constant 0 : index
    %43 = vector.load %arg2[%c7, %c0_52, %c0_53] : memref<9x4x32xf32, #tpu.memory_space<vmem>>, vector<1x4x32xf32>
    %44 = vector.shape_cast %43 : vector<1x4x32xf32> to vector<4x32xf32>
    %cst_54 = arith.constant dense<0.000000e+00> : vector<256x32xf32>
    %45 = tpu.matmul %42, %44, %cst_54 {dimension_numbers = #tpu.dot_dimension_numbers<[1], [0], [0], [1], [0, 0, 1, 1], [], []>} : vector<256x4xf32>, vector<4x32xf32>, vector<256x32xf32> -> vector<256x32xf32>
    %46 = arith.addf %40, %45 : vector<256x32xf32>
    %c0_55 = arith.constant 0 : index
    %c2_56 = arith.constant 2 : index
    %c2_57 = arith.constant 2 : index
    %c0_58 = arith.constant 0 : index
    %47 = vector.load %arg1[%c0_55, %c2_56, %c2_57, %c0_58] : memref<1x18x18x4xf32, #tpu.memory_space<vmem>>, vector<1x16x16x4xf32>
    %48 = vector.shape_cast %47 : vector<1x16x16x4xf32> to vector<256x4xf32>
    %c8 = arith.constant 8 : index
    %c0_59 = arith.constant 0 : index
    %c0_60 = arith.constant 0 : index
    %49 = vector.load %arg2[%c8, %c0_59, %c0_60] : memref<9x4x32xf32, #tpu.memory_space<vmem>>, vector<1x4x32xf32>
    %50 = vector.shape_cast %49 : vector<1x4x32xf32> to vector<4x32xf32>
    %cst_61 = arith.constant dense<0.000000e+00> : vector<256x32xf32>
    %51 = tpu.matmul %48, %50, %cst_61 {dimension_numbers = #tpu.dot_dimension_numbers<[1], [0], [0], [1], [0, 0, 1, 1], [], []>} : vector<256x4xf32>, vector<4x32xf32>, vector<256x32xf32> -> vector<256x32xf32>
    %52 = arith.addf %46, %51 : vector<256x32xf32>
    %cst_62 = arith.constant dense<0.000000e+00> : vector<32xf32>
    %53 = vector.multi_reduction <add>, %52, %cst_62 [0] : vector<256x32xf32> to vector<32xf32>
    %54 = vector.shape_cast %53 : vector<32xf32> to vector<1x32xf32>
    %55 = arith.mulf %52, %52 : vector<256x32xf32>
    %cst_63 = arith.constant dense<0.000000e+00> : vector<32xf32>
    %56 = vector.multi_reduction <add>, %55, %cst_63 [0] : vector<256x32xf32> to vector<32xf32>
    %57 = vector.shape_cast %56 : vector<32xf32> to vector<1x32xf32>
    %58 = vector.extract_strided_slice %54 {offsets = [0, 0], sizes = [1, 8], strides = [1, 1]} : vector<1x32xf32> to vector<1x8xf32>
    %cst_64 = arith.constant 0.000000e+00 : f32
    %59 = vector.broadcast %cst_64 : f32 to vector<1x8xf32>
    %60 = arith.addf %59, %58 : vector<1x8xf32>
    %61 = vector.extract_strided_slice %54 {offsets = [0, 8], sizes = [1, 8], strides = [1, 1]} : vector<1x32xf32> to vector<1x8xf32>
    %62 = arith.addf %60, %61 : vector<1x8xf32>
    %63 = vector.extract_strided_slice %54 {offsets = [0, 16], sizes = [1, 8], strides = [1, 1]} : vector<1x32xf32> to vector<1x8xf32>
    %64 = arith.addf %62, %63 : vector<1x8xf32>
    %65 = vector.extract_strided_slice %54 {offsets = [0, 24], sizes = [1, 8], strides = [1, 1]} : vector<1x32xf32> to vector<1x8xf32>
    %66 = arith.addf %64, %65 : vector<1x8xf32>
    %67 = vector.extract_strided_slice %57 {offsets = [0, 0], sizes = [1, 8], strides = [1, 1]} : vector<1x32xf32> to vector<1x8xf32>
    %cst_65 = arith.constant 0.000000e+00 : f32
    %68 = vector.broadcast %cst_65 : f32 to vector<1x8xf32>
    %69 = arith.addf %68, %67 : vector<1x8xf32>
    %70 = vector.extract_strided_slice %57 {offsets = [0, 8], sizes = [1, 8], strides = [1, 1]} : vector<1x32xf32> to vector<1x8xf32>
    %71 = arith.addf %69, %70 : vector<1x8xf32>
    %72 = vector.extract_strided_slice %57 {offsets = [0, 16], sizes = [1, 8], strides = [1, 1]} : vector<1x32xf32> to vector<1x8xf32>
    %73 = arith.addf %71, %72 : vector<1x8xf32>
    %74 = vector.extract_strided_slice %57 {offsets = [0, 24], sizes = [1, 8], strides = [1, 1]} : vector<1x32xf32> to vector<1x8xf32>
    %75 = arith.addf %73, %74 : vector<1x8xf32>
    %76 = tpu.concatenate %66, %75 in 0 : vector<1x8xf32>, vector<1x8xf32> -> vector<2x8xf32>
    %77 = vector.shape_cast %76 : vector<2x8xf32> to vector<1x2x8xf32>
    %c0_66 = arith.constant 0 : index
    %c0_67 = arith.constant 0 : index
    %c0_68 = arith.constant 0 : index
    %78 = vector.load %arg3[%c0_66, %c0_67, %c0_68] : memref<1x2x8xf32, #tpu.memory_space<vmem>>, vector<1x2x8xf32>
    tpu.vector_store %arg3[%c0_66, %c0_67, %c0_68], %77 {strides = array<i32>} : memref<1x2x8xf32, #tpu.memory_space<vmem>>, vector<1x2x8xf32>,
    return
  }
  func.func @transform_0(%arg0: i32) -> (i32, i32, i32, i32) {
    %c0_i32 = arith.constant 0 : i32
    %c0_i32_0 = arith.constant 0 : i32
    %c0_i32_1 = arith.constant 0 : i32
    %c0_i32_2 = arith.constant 0 : i32
    return %arg0, %c0_i32, %c0_i32_0, %c0_i32_1 : i32, i32, i32, i32
  }
  func.func @transform_1(%arg0: i32) -> (i32, i32, i32) {
    %c0_i32 = arith.constant 0 : i32
    %c0_i32_0 = arith.constant 0 : i32
    %c0_i32_1 = arith.constant 0 : i32
    %c0_i32_2 = arith.constant 0 : i32
    return %c0_i32, %c0_i32_0, %c0_i32_1 : i32, i32, i32
  }
  func.func @transform_2(%arg0: i32) -> (i32, i32, i32) {
    %c0_i32 = arith.constant 0 : i32
    %c0_i32_0 = arith.constant 0 : i32
    %c0_i32_1 = arith.constant 0 : i32
    return %arg0, %c0_i32, %c0_i32_0 : i32, i32, i32
  }
}

</mosaic_0001>

<bundles_post_ra>
// kernel: tpu_custom_call.1
= control target key start
LH: loop header
LB: loop body
LE: loop exit
PB: predicated region body
PF: predicated region fallthrough
CT: control target
= control target key end

     0   :  { %7 = vsyncpa [#allocation3], 0  ;;  %s6776_s0 = inlined_call_operand.vmem [shape: f32[2,18,18,4], index: 0, kind: input, shape index: {}]   ;;  %s6777_s1 = inlined_call_operand.vmem [shape: f32[9,4,32], index: 1, kind: input, shape index: {}]   ;;  %s6778_s2 = inlined_call_operand.hbm [shape: f32[2,2,8], index: 2, kind: output, shape index: {}]  }
   0x1   :  { %9 = vsyncpa [#allocation3 + $0x1], 0  ;;  %s5250_s9 = smov 0   ;;  %s5252_s10 = smov 0  }
   0x2   :  { %s5254_s11 = smov 0   ;;  %s5256_s12 = smov 0  }
   0x3 LB: > { %s5271_s13 = sadd.s32 4294967295, %s5229_s12   ;;  %s3870_s14 = sadd.s32 4294967294, %s5229_s12   ;;  %s5229_s12 = sphi %s5256_s12, %s6958_s12   ;;  %s5225_s11 = sphi %s5254_s11, %s6957_s11   ;;  %s5221_s10 = sphi %s5252_s10, %s6956_s10   ;;  %s5217_s9 = sphi %s5250_s9, %s6955_s9  }
   0x4   : > { %s5275_s15 = sadd.s32 1, %s5229_s12   ;;  %s69_s16 = sadd.s32 1, %s5225_s11 }
   0x5   : > { %s66_s17 = ssub.s32 %s5229_s12, %s5275_s15  ;;  %p79_p0 = scmp.ne.s32.totalorder %s5225_s11, %s5221_s10 }
   0x6   : > { %p67_p1 = scmp.eq.s32.totalorder %s66_s17, 0  ;;  %p80_p2 = scmp.eq.s32.totalorder %s5271_s13, 1 }
   0x7   : > { %p85_p3 = scmp.ne.s32.totalorder %s5221_s10, %s5217_s9  ;;  %p86_p4 = scmp.eq.s32.totalorder %s3870_s14, 1 }
   0x8   : > { %s5286_s18 = scalar_select %p67_p1, %s5225_s11, %s69_s16  }
   0x9   : > { %p5288_p5 = por %p80_p2, %p79_p0  ;;  %p5292_p6 = por %p86_p4, %p85_p3 }
   0xa   : > { %p3873_p7 = scmp.ge.s32.totalorder %s5229_s12, 1  ;;  %p115_p8 = scmp.lt.s32.totalorder %s5229_s12, 3 }
   0xc   : > { %p116_p9 = pnand %p3873_p7, %p115_p8 }
   0xe   : > { %119 = sbr.rel (%p116_p9) target bundleno = 670 (0x29e), region = 28 }
  0x13   : > { %v3876_v0 = vld [vmem:[%s6777_s1 + $0x4] sm:$0xf]  ;;  %vm306_vm0 = vcmask 1043456   ;;  %p137_p10 = scmp.lt.s32.totalorder %s5271_s13, 1  ;;  %v174_v1 = vld [vmem:[%s6777_s1] sm:$0xf] }
  0x14   : > { %5124 = vmatprep.subr.msk.mxu1 %vm306_vm0, %v3876_v0  ;;  %4674 = vmatprep.subr.msk.mxu0 %vm306_vm0, %v3876_v0  ;;  %v3943_v2 = vld [vmem:[%s6777_s1 + $0x8] sm:$0xf]  ;;  %vm209_vm1 = vcmask 31744   ;;  %v5343_v9 = vld [vmem:[%s6777_s1 + $0xc] sm:$0xf]  ;;  %vm3591_vm2 = vcmask 261120  }
  0x15   : > { %5125 = vmatpush3.msk.msra.mxu1 %vm306_vm0, %v3876_v0  ;;  %4675 = vmatpush3.msk.msra.mxu0 %vm306_vm0, %v3876_v0  ;;  %s138_s27 = scalar_select %p137_p10, %s5271_s13, 1  ;;  %v5348_v10 = vld [vmem:[%s6777_s1 + $0x10] sm:$0xf]  ;;  %v5507_v43 = vld [vmem:[%s6777_s1 + $0x14] sm:$0xf]  ;;  %vm3793_vm3 = vcmask 1040384  }
  0x16   : > { %4724 = vmatprep.subr.msk.mxu1 %vm306_vm0, %v174_v1  ;;  %4774 = vmatprep.subr.msk.mxu0 %vm306_vm0, %v3943_v2  ;;  %v5512_v44 = vld [vmem:[%s6777_s1 + $0x18] sm:$0xf]  ;;  %s5231_s25 = smov 112   ;;  %s5232_s26 = smov 120   ;;  %vm3795_vm4 = vcmask 58368  }
  0x17   : > { %s5126_s28 = smul.u32 432, %s138_s27  ;;  %s5233_s27 = smov 104  }
  0x18   : > { %s4374_s30 = sshll.u32 %s5271_s13, 5  ;;  %s5234_s13 = smov [#allocation2]  }
  0x19   : > { %s5318_s3 = scalar_lea.vmem %s6776_s0, %s5126_s28  ;;  %s134_s28 = sand.u32 1, %s5221_s10  }
  0x1a   : > { %v175_v3 = vld [vmem:[%s5318_s3 + $0x1] sm:$0xff]  ;;  %v176_v5 = vld [vmem:[%s5318_s3 + $0x9] sm:$0xff]  ;;  %v5332_v7 = vld [vmem:[%s5318_s3 + $0x19] sm:$0xff]  ;;  %s3874_s29 = sshll.u32 %s134_s28, 1  ;;  %s6741_s7 = scalar_lea.hbm %s6778_s2, %s4374_s30 }
  0x1b   : > { %v5322_v4 = vld [vmem:[%s5318_s3 + $0xc1] sm:$0xff]  ;;  %4676 = vmatprep.mubr.msk.f32.mxu0 %vm209_vm1, %v175_v3  ;;  %v5329_v6 = vld [vmem:[%s5318_s3 + $0xc9] sm:$0xff]  ;;  %v5335_v8 = vld [vmem:[%s5318_s3 + $0xd9] sm:$0xff]  ;;  %s3798_s8 = scalar_lea.sflag [#allocation3], %s134_s28  ;;  %s5173_s16 = sshll.u32 %s5234_s13, 4  ;;  %s5174_s16 = int_to_ptr.vmem [resolvable:$false] %s5173_s16 }
  0x1c   : > { %4700 = vmatprep.mubr.msk.f32.mxu1 %vm209_vm1, %v5322_v4  ;;  %4677 = vmatmul.mubr.msk.f32.vlgmr.msra.gmra.mxu0 %vm209_vm1, %v176_v5  ;;  %v5353_v11 = vld [vmem:[%s5318_s3 + $0x21] sm:$0xff]  ;;  %v5363_v13 = vld [vmem:[%s5318_s3 + $0x31] sm:$0xff]  ;;  %v5381_v15 = vld [vmem:[%s5318_s3 + $0x39] sm:$0xff]  ;;  %s5175_s17 = scalar_lea.vmem %s5174_s16, 64 }
  0x1d   : > { %4701 = vmatmul.mubr.msk.f32.vlgmr.msra.gmra.mxu1 %vm209_vm1, %v5329_v6  ;;  %4775 = vmatpush3.msk.msra.mxu0 %vm306_vm0, %v3943_v2  ;;  %v5356_v12 = vld [vmem:[%s5318_s3 + $0xe1] sm:$0xff]  ;;  %v5366_v14 = vld [vmem:[%s5318_s3 + $0xf1] sm:$0xff]  ;;  %v5384_v16 = vld [vmem:[%s5318_s3 + $0xf9] sm:$0xff] }
  0x1e   : > { %4725 = vmatpush3.msk.msra.mxu1 %vm306_vm0, %v174_v1  ;;  %4679 = vmatprep.mubr.msk.f32.mxu0 %vm209_vm1, %v5332_v7  ;;  %v5387_v17 = vld [vmem:[%s5318_s3 + $0x49] sm:$0xff]  ;;  %v5401_v19 = vld [vmem:[%s5318_s3 + $0x51] sm:$0xff]  ;;  %v5407_v21 = vld [vmem:[%s5318_s3 + $0x61] sm:$0xff] }
  0x1f   : > { %4703 = vmatprep.mubr.msk.f32.mxu1 %vm209_vm1, %v5335_v8  ;;  %4824 = vmatprep.subr.msk.mxu1 %vm306_vm0, %v5343_v9  ;;  %v5390_v18 = vld [vmem:[%s5318_s3 + $0x109] sm:$0xff]  ;;  %v5404_v20 = vld [vmem:[%s5318_s3 + $0x111] sm:$0xff]  ;;  %v5410_v22 = vld [vmem:[%s5318_s3 + $0x121] sm:$0xff] }
  0x20   : > { %4874 = vmatprep.subr.msk.mxu0 %vm306_vm0, %v5348_v10  ;;  %4680 = vmatmul.mubr.msk.f32.gmra.mxu0 %vm209_vm1, %v5353_v11  ;;  %v5421_v23 = vld [vmem:[%s5318_s3 + $0x69] sm:$0xff]  ;;  %v5427_v25 = vld [vmem:[%s5318_s3 + $0x79] sm:$0xff]  ;;  %v5441_v27 = vld [vmem:[%s5318_s3 + $0x81] sm:$0xff] }
  0x21   : > { %4704 = vmatmul.mubr.msk.f32.gmra.mxu1 %vm209_vm1, %v5356_v12  ;;  %4682 = vmatprep.mubr.msk.f32.mxu0 %vm209_vm1, %v5363_v13  ;;  %v5424_v24 = vld [vmem:[%s5318_s3 + $0x129] sm:$0xff]  ;;  %v5430_v26 = vld [vmem:[%s5318_s3 + $0x139] sm:$0xff]  ;;  %v5444_v28 = vld [vmem:[%s5318_s3 + $0x141] sm:$0xff] }
  0x22   : > { %4706 = vmatprep.mubr.msk.f32.mxu1 %vm209_vm1, %v5366_v14  ;;  %v5447_v29 = vld [vmem:[%s5318_s3 + $0x91] sm:$0xff]  ;;  %v5461_v31 = vld [vmem:[%s5318_s3 + $0x99] sm:$0xff]  ;;  %v5467_v33 = vld [vmem:[%s5318_s3 + $0xa9] sm:$0xff] }
  0x23   : > { %v5450_v30 = vld [vmem:[%s5318_s3 + $0x151] sm:$0xff]  ;;  %v5464_v32 = vld [vmem:[%s5318_s3 + $0x159] sm:$0xff]  ;;  %v5470_v34 = vld [vmem:[%s5318_s3 + $0x169] sm:$0xff] }
  0x24   : > { %4683 = vmatmul.mubr.msk.f32.gmra.mxu0 %vm209_vm1, %v5381_v15  ;;  %v5481_v35 = vld [vmem:[%s5318_s3 + $0xb1] sm:$0xff]  ;;  %v142_v37 = vld [vmem:[%s5318_s3] sm:$0xff]  ;;  %v143_v39 = vld [vmem:[%s5318_s3 + $0x8] sm:$0xff] }
  0x25   : > { %4707 = vmatmul.mubr.msk.f32.gmra.mxu1 %vm209_vm1, %v5384_v16  ;;  %4685 = vmatprep.mubr.msk.f32.mxu0 %vm209_vm1, %v5387_v17  ;;  %v5484_v36 = vld [vmem:[%s5318_s3 + $0x171] sm:$0xff]  ;;  %v859_v38 = vld [vmem:[%s5318_s3 + $0x2] sm:$0xff]  ;;  %v5500_v42 = vld [vmem:[%s5318_s3 + $0x1a] sm:$0xff] }
  0x26   : > { %4709 = vmatprep.mubr.msk.f32.mxu1 %vm209_vm1, %v5390_v18  ;;  %6841 = vst [vmem:[#allocation5_spill] sm:$0xff] %v5484_v36  ;;  %v860_v40 = vld [vmem:[%s5318_s3 + $0xa] sm:$0xff]  ;;  %v5497_v41 = vld [vmem:[%s5318_s3 + $0x18] sm:$0xff]  ;;  %6842 = vst [vmem:[#allocation6_spill] sm:$0xff] %v5500_v42 }
  0x27   : > { %v5519_v45 = vld [vmem:[%s5318_s3 + $0x20] sm:$0xff]  ;;  %v5529_v47 = vld [vmem:[%s5318_s3 + $0x30] sm:$0xff]  ;;  %v5547_v49 = vld [vmem:[%s5318_s3 + $0x38] sm:$0xff] }
  0x28   : > { %4686 = vmatmul.mubr.msk.f32.gmra.mxu0 %vm209_vm1, %v5401_v19  ;;  %v5522_v46 = vld [vmem:[%s5318_s3 + $0x22] sm:$0xff]  ;;  %v5532_v48 = vld [vmem:[%s5318_s3 + $0x32] sm:$0xff]  ;;  %v5550_v50 = vld [vmem:[%s5318_s3 + $0x3a] sm:$0xff] }
  0x29   : > { %4710 = vmatmul.mubr.msk.f32.gmra.mxu1 %vm209_vm1, %v5404_v20  ;;  %4688 = vmatprep.mubr.msk.f32.mxu0 %vm209_vm1, %v5407_v21  ;;  %6843 = vst [vmem:[#allocation7_spill] sm:$0xff] %v5522_v46  ;;  %6844 = vst [vmem:[#allocation8_spill] sm:$0xff] %v5532_v48  ;;  %v5553_v51 = vld [vmem:[%s5318_s3 + $0x48] sm:$0xff]  ;;  %v5567_v53 = vld [vmem:[%s5318_s3 + $0x50] sm:$0xff] }
  0x2a   : > { %4712 = vmatprep.mubr.msk.f32.mxu1 %vm209_vm1, %v5410_v22  ;;  %6845 = vst [vmem:[#allocation9_spill] sm:$0xff] %v5550_v50  ;;  %v5556_v52 = vld [vmem:[%s5318_s3 + $0x4a] sm:$0xff]  ;;  %v5570_v54 = vld [vmem:[%s5318_s3 + $0x52] sm:$0xff]  ;;  %v5573_v55 = vld [vmem:[%s5318_s3 + $0x60] sm:$0xff] }
  0x2b   : > { %6846 = vst [vmem:[#allocation10_spill] sm:$0xff] %v5556_v52  ;;  %6847 = vst [vmem:[#allocation11_spill] sm:$0xff] %v5570_v54  ;;  %v5576_v56 = vld [vmem:[%s5318_s3 + $0x62] sm:$0xff]  ;;  %v5590_v58 = vld [vmem:[%s5318_s3 + $0x6a] sm:$0xff] }
  0x2c   : > { %4689 = vmatmul.mubr.msk.f32.gmra.mxu0 %vm209_vm1, %v5421_v23  ;;  %6848 = vst [vmem:[#allocation12_spill] sm:$0xff] %v5576_v56  ;;  %v5587_v57 = vld [vmem:[%s5318_s3 + $0x68] sm:$0xff]  ;;  %6849 = vst [vmem:[#allocation13_spill] sm:$0xff] %v5590_v58  ;;  %v5593_v59 = vld [vmem:[%s5318_s3 + $0x78] sm:$0xff] }
  0x2d   : > { %4713 = vmatmul.mubr.msk.f32.gmra.mxu1 %vm209_vm1, %v5424_v24  ;;  %4691 = vmatprep.mubr.msk.f32.mxu0 %vm209_vm1, %v5427_v25  ;;  %v5596_v60 = vld [vmem:[%s5318_s3 + $0x7a] sm:$0xff]  ;;  %v5610_v62 = vld [vmem:[%s5318_s3 + $0x82] sm:$0xff]  ;;  %v5613_v63 = vld [vmem:[%s5318_s3 + $0x90] sm:$0xff] }
  0x2e   : > { %4715 = vmatprep.mubr.msk.f32.mxu1 %vm209_vm1, %v5430_v26  ;;  %6850 = vst [vmem:[#allocation14_spill] sm:$0xff] %v5596_v60  ;;  %v5607_v61 = vld [vmem:[%s5318_s3 + $0x80] sm:$0xff]  ;;  %6851 = vst [vmem:[#allocation15_spill] sm:$0xff] %v5610_v62  ;;  %v5616_v0 = vld [vmem:[%s5318_s3 + $0x92] sm:$0xff] }
  0x2f   : > { %6852 = vst [vmem:[#allocation16_spill] sm:$0xff] %v5616_v0  ;;  %v5627_v1 = vld [vmem:[%s5318_s3 + $0x98] sm:$0xff]  ;;  %v5633_v3 = vld [vmem:[%s5318_s3 + $0xa8] sm:$0xff] }
  0x30   : > { %4692 = vmatmul.mubr.msk.f32.gmra.mxu0 %vm209_vm1, %v5441_v27  ;;  %v5630_v2 = vld [vmem:[%s5318_s3 + $0x9a] sm:$0xff]  ;;  %v5636_v5 = vld [vmem:[%s5318_s3 + $0xaa] sm:$0xff] }
  0x31   : > { %4716 = vmatmul.mubr.msk.f32.gmra.mxu1 %vm209_vm1, %v5444_v28  ;;  %4694 = vmatprep.mubr.msk.f32.mxu0 %vm209_vm1, %v5447_v29  ;;  %6853 = vst [vmem:[#allocation17_spill] sm:$0xff] %v5630_v2  ;;  %6854 = vst [vmem:[#allocation18_spill] sm:$0xff] %v5636_v5 }
  0x32   : > { %4718 = vmatprep.mubr.msk.f32.mxu1 %vm209_vm1, %v5450_v30 }
  0x34   : > { %4695 = vmatmul.mubr.msk.f32.gmra.mxu0 %vm209_vm1, %v5461_v31 }
  0x35   : > { %4719 = vmatmul.mubr.msk.f32.gmra.mxu1 %vm209_vm1, %v5464_v32  ;;  %4697 = vmatprep.mubr.msk.f32.mxu0 %vm209_vm1, %v5467_v33 }
  0x36   : > { %4721 = vmatprep.mubr.msk.f32.mxu1 %vm209_vm1, %v5470_v34 }
  0x38   : > { %4698 = vmatmul.mubr.msk.f32.gmra.mxu0 %vm209_vm1, %v5481_v35 }
  0x39   : > { %4722 = vmatmul.mubr.msk.f32.gmra.mxu1 %vm209_vm1, %v5484_v36  ;;  %4776 = vmatprep.mubr.msk.f32.mxu0 %vm209_vm1, %v859_v38  ;;  %v5656_v38 = vld [vmem:[%s5318_s3 + $0xc2] sm:$0xff]  ;;  %v5796_v36 = vld [vmem:[%s5318_s3 + $0x16a] sm:$0xff] }
  0x3a   : > { %4726 = vmatprep.mubr.msk.f32.mxu1 %vm209_vm1, %v142_v37  ;;  %v5653_v37 = vld [vmem:[%s5318_s3 + $0xc0] sm:$0xff]  ;;  %6856 = vst [vmem:[#allocation20_spill] sm:$0xff] %v5656_v38  ;;  %6870 = vst [vmem:[#allocation34_spill] sm:$0xff] %v5796_v36 }
  0x3c   : > { %4777 = vmatmul.mubr.msk.f32.vlgmr.msra.gmra.mxu0 %vm209_vm1, %v860_v40  ;;  %v5670_v40 = vld [vmem:[%s5318_s3 + $0xca] sm:$0xff] }
  0x3d   : > { %4727 = vmatmul.mubr.msk.f32.vlgmr.msra.gmra.mxu1 %vm209_vm1, %v143_v39  ;;  %4875 = vmatpush3.msk.msra.mxu0 %vm306_vm0, %v5348_v10  ;;  %v5650_v10 = vld [vmem:[%s5318_s3 + $0xb2] sm:$0xff]  ;;  %v5667_v39 = vld [vmem:[%s5318_s3 + $0xc8] sm:$0xff]  ;;  %6857 = vst [vmem:[#allocation21_spill] sm:$0xff] %v5670_v40 }
  0x3e   : > { %4825 = vmatpush3.msk.msra.mxu1 %vm306_vm0, %v5343_v9  ;;  %4729 = vmatprep.mubr.msk.f32.mxu1 %vm209_vm1, %v5497_v41  ;;  %v5647_v9 = vld [vmem:[%s5318_s3 + $0xb0] sm:$0xff]  ;;  %6855 = vst [vmem:[#allocation19_spill] sm:$0xff] %v5650_v10 }
  0x3f   : > { %4779 = vmatprep.mubr.msk.f32.mxu0 %vm209_vm1, %v5500_v42  ;;  %4924 = vmatprep.subr.msk.mxu1 %vm306_vm0, %v5507_v43  ;;  %v5793_v42 = vld [vmem:[%s5318_s3 + $0x168] sm:$0xff] }
  0x40   : > { %4974 = vmatprep.subr.msk.mxu0 %vm306_vm0, %v5512_v44  ;;  %4780 = vmatmul.mubr.msk.f32.gmra.mxu0 %vm209_vm1, %v5522_v46  ;;  %v5776_v46 = vld [vmem:[%s5318_s3 + $0x152] sm:$0xff] }
  0x41   : > { %4730 = vmatmul.mubr.msk.f32.gmra.mxu1 %vm209_vm1, %v5519_v45  ;;  %4782 = vmatprep.mubr.msk.f32.mxu0 %vm209_vm1, %v5532_v48  ;;  %v5773_v48 = vld [vmem:[%s5318_s3 + $0x150] sm:$0xff]  ;;  %6868 = vst [vmem:[#allocation32_spill] sm:$0xff] %v5776_v46 }
  0x42   : > { %4732 = vmatprep.mubr.msk.f32.mxu1 %vm209_vm1, %v5529_v47 }
  0x44   : > { %4783 = vmatmul.mubr.msk.f32.gmra.mxu0 %vm209_vm1, %v5550_v50  ;;  %v5756_v50 = vld [vmem:[%s5318_s3 + $0x13a] sm:$0xff] }
  0x45   : > { %4733 = vmatmul.mubr.msk.f32.gmra.mxu1 %vm209_vm1, %v5547_v49  ;;  %4785 = vmatprep.mubr.msk.f32.mxu0 %vm209_vm1, %v5556_v52  ;;  %v5753_v52 = vld [vmem:[%s5318_s3 + $0x138] sm:$0xff]  ;;  %6866 = vst [vmem:[#allocation30_spill] sm:$0xff] %v5756_v50 }
  0x46   : > { %4735 = vmatprep.mubr.msk.f32.mxu1 %vm209_vm1, %v5553_v51 }
  0x48   : > { %4786 = vmatmul.mubr.msk.f32.gmra.mxu0 %vm209_vm1, %v5570_v54  ;;  %v5736_v54 = vld [vmem:[%s5318_s3 + $0x122] sm:$0xff] }
  0x49   : > { %4736 = vmatmul.mubr.msk.f32.gmra.mxu1 %vm209_vm1, %v5567_v53  ;;  %4788 = vmatprep.mubr.msk.f32.mxu0 %vm209_vm1, %v5576_v56  ;;  %v5733_v56 = vld [vmem:[%s5318_s3 + $0x120] sm:$0xff]  ;;  %6864 = vst [vmem:[#allocation28_spill] sm:$0xff] %v5736_v54 }
  0x4a   : > { %4738 = vmatprep.mubr.msk.f32.mxu1 %vm209_vm1, %v5573_v55 }
  0x4c   : > { %4789 = vmatmul.mubr.msk.f32.gmra.mxu0 %vm209_vm1, %v5590_v58  ;;  %v5716_v58 = vld [vmem:[%s5318_s3 + $0x10a] sm:$0xff] }
  0x4d   : > { %4739 = vmatmul.mubr.msk.f32.gmra.mxu1 %vm209_vm1, %v5587_v57  ;;  %4791 = vmatprep.mubr.msk.f32.mxu0 %vm209_vm1, %v5596_v60  ;;  %v5713_v60 = vld [vmem:[%s5318_s3 + $0x108] sm:$0xff]  ;;  %6862 = vst [vmem:[#allocation26_spill] sm:$0xff] %v5716_v58 }
  0x4e   : > { %4741 = vmatprep.mubr.msk.f32.mxu1 %vm209_vm1, %v5593_v59 }
  0x50   : > { %4792 = vmatmul.mubr.msk.f32.gmra.mxu0 %vm209_vm1, %v5610_v62  ;;  %v5696_v62 = vld [vmem:[%s5318_s3 + $0xf2] sm:$0xff] }
  0x51   : > { %4742 = vmatmul.mubr.msk.f32.gmra.mxu1 %vm209_vm1, %v5607_v61  ;;  %4794 = vmatprep.mubr.msk.f32.mxu0 %vm209_vm1, %v5616_v0  ;;  %v5693_v0 = vld [vmem:[%s5318_s3 + $0xf0] sm:$0xff]  ;;  %6860 = vst [vmem:[#allocation24_spill] sm:$0xff] %v5696_v62 }
  0x52   : > { %4744 = vmatprep.mubr.msk.f32.mxu1 %vm209_vm1, %v5613_v63 }
  0x54   : > { %4795 = vmatmul.mubr.msk.f32.gmra.mxu0 %vm209_vm1, %v5630_v2  ;;  %v5676_v2 = vld [vmem:[%s5318_s3 + $0xda] sm:$0xff] }
  0x55   : > { %4745 = vmatmul.mubr.msk.f32.gmra.mxu1 %vm209_vm1, %v5627_v1  ;;  %4797 = vmatprep.mubr.msk.f32.mxu0 %vm209_vm1, %v5636_v5  ;;  %v5673_v5 = vld [vmem:[%s5318_s3 + $0xd8] sm:$0xff]  ;;  %6858 = vst [vmem:[#allocation22_spill] sm:$0xff] %v5676_v2 }
  0x56   : > { %4747 = vmatprep.mubr.msk.f32.mxu1 %vm209_vm1, %v5633_v3 }
  0x58   : > { %4798 = vmatmul.mubr.msk.f32.gmra.mxu0 %vm209_vm1, %v5650_v10  ;;  %v5690_v10 = vld [vmem:[%s5318_s3 + $0xe2] sm:$0xff] }
  0x59   : > { %4748 = vmatmul.mubr.msk.f32.gmra.mxu1 %vm209_vm1, %v5647_v9  ;;  %4800 = vmatprep.mubr.msk.f32.mxu0 %vm209_vm1, %v5656_v38  ;;  %v5687_v38 = vld [vmem:[%s5318_s3 + $0xe0] sm:$0xff]  ;;  %6859 = vst [vmem:[#allocation23_spill] sm:$0xff] %v5690_v10 }
  0x5a   : > { %4750 = vmatprep.mubr.msk.f32.mxu1 %vm209_vm1, %v5653_v37 }
  0x5c   : > { %4801 = vmatmul.mubr.msk.f32.gmra.mxu0 %vm209_vm1, %v5670_v40  ;;  %v5710_v40 = vld [vmem:[%s5318_s3 + $0xfa] sm:$0xff] }
  0x5d   : > { %4751 = vmatmul.mubr.msk.f32.gmra.mxu1 %vm209_vm1, %v5667_v39  ;;  %4803 = vmatprep.mubr.msk.f32.mxu0 %vm209_vm1, %v5676_v2  ;;  %v5707_v2 = vld [vmem:[%s5318_s3 + $0xf8] sm:$0xff]  ;;  %6861 = vst [vmem:[#allocation25_spill] sm:$0xff] %v5710_v40 }
  0x5e   : > { %4753 = vmatprep.mubr.msk.f32.mxu1 %vm209_vm1, %v5673_v5 }
  0x60   : > { %4804 = vmatmul.mubr.msk.f32.gmra.mxu0 %vm209_vm1, %v5690_v10  ;;  %v5730_v10 = vld [vmem:[%s5318_s3 + $0x112] sm:$0xff] }
  0x61   : > { %4754 = vmatmul.mubr.msk.f32.gmra.mxu1 %vm209_vm1, %v5687_v38  ;;  %4806 = vmatprep.mubr.msk.f32.mxu0 %vm209_vm1, %v5696_v62  ;;  %v5727_v62 = vld [vmem:[%s5318_s3 + $0x110] sm:$0xff]  ;;  %6863 = vst [vmem:[#allocation27_spill] sm:$0xff] %v5730_v10 }
  0x62   : > { %4756 = vmatprep.mubr.msk.f32.mxu1 %vm209_vm1, %v5693_v0 }
  0x64   : > { %4807 = vmatmul.mubr.msk.f32.gmra.mxu0 %vm209_vm1, %v5710_v40  ;;  %v5750_v40 = vld [vmem:[%s5318_s3 + $0x12a] sm:$0xff] }
  0x65   : > { %4757 = vmatmul.mubr.msk.f32.gmra.mxu1 %vm209_vm1, %v5707_v2  ;;  %4809 = vmatprep.mubr.msk.f32.mxu0 %vm209_vm1, %v5716_v58  ;;  %v5747_v58 = vld [vmem:[%s5318_s3 + $0x128] sm:$0xff]  ;;  %6865 = vst [vmem:[#allocation29_spill] sm:$0xff] %v5750_v40 }
  0x66   : > { %4759 = vmatprep.mubr.msk.f32.mxu1 %vm209_vm1, %v5713_v60 }
  0x68   : > { %4810 = vmatmul.mubr.msk.f32.gmra.mxu0 %vm209_vm1, %v5730_v10  ;;  %v5770_v10 = vld [vmem:[%s5318_s3 + $0x142] sm:$0xff] }
  0x69   : > { %4760 = vmatmul.mubr.msk.f32.gmra.mxu1 %vm209_vm1, %v5727_v62  ;;  %4812 = vmatprep.mubr.msk.f32.mxu0 %vm209_vm1, %v5736_v54  ;;  %v5767_v54 = vld [vmem:[%s5318_s3 + $0x140] sm:$0xff]  ;;  %6867 = vst [vmem:[#allocation31_spill] sm:$0xff] %v5770_v10 }
  0x6a   : > { %4762 = vmatprep.mubr.msk.f32.mxu1 %vm209_vm1, %v5733_v56 }
  0x6c   : > { %4813 = vmatmul.mubr.msk.f32.gmra.mxu0 %vm209_vm1, %v5750_v40  ;;  %v5790_v40 = vld [vmem:[%s5318_s3 + $0x15a] sm:$0xff] }
  0x6d   : > { %4763 = vmatmul.mubr.msk.f32.gmra.mxu1 %vm209_vm1, %v5747_v58  ;;  %4815 = vmatprep.mubr.msk.f32.mxu0 %vm209_vm1, %v5756_v50  ;;  %v5787_v50 = vld [vmem:[%s5318_s3 + $0x158] sm:$0xff]  ;;  %6869 = vst [vmem:[#allocation33_spill] sm:$0xff] %v5790_v40 }
  0x6e   : > { %4765 = vmatprep.mubr.msk.f32.mxu1 %vm209_vm1, %v5753_v52 }
  0x70   : > { %4816 = vmatmul.mubr.msk.f32.gmra.mxu0 %vm209_vm1, %v5770_v10  ;;  %v5810_v10 = vld [vmem:[%s5318_s3 + $0x172] sm:$0xff] }
  0x71   : > { %4766 = vmatmul.mubr.msk.f32.gmra.mxu1 %vm209_vm1, %v5767_v54  ;;  %4818 = vmatprep.mubr.msk.f32.mxu0 %vm209_vm1, %v5776_v46  ;;  %v5807_v46 = vld [vmem:[%s5318_s3 + $0x170] sm:$0xff]  ;;  %6871 = vst [vmem:[#allocation35_spill] sm:$0xff] %v5810_v10 }
  0x72   : > { %4768 = vmatprep.mubr.msk.f32.mxu1 %vm209_vm1, %v5773_v48 }
  0x74   : > { %4819 = vmatmul.mubr.msk.f32.gmra.mxu0 %vm209_vm1, %v5790_v40 }
  0x75   : > { %4769 = vmatmul.mubr.msk.f32.gmra.mxu1 %vm209_vm1, %v5787_v50  ;;  %4821 = vmatprep.mubr.msk.f32.mxu0 %vm209_vm1, %v5796_v36  ;;  %v5827_v36 = vld [vmem:[%s6777_s1 + $0x1c] sm:$0xf] }
  0x76   : > { %4771 = vmatprep.mubr.msk.f32.mxu1 %vm209_vm1, %v5793_v42 }
  0x78   : > { %4822 = vmatmul.mubr.msk.f32.gmra.mxu0 %vm209_vm1, %v5810_v10  ;;  %v5832_v10 = vld [vmem:[%s6777_s1 + $0x20] sm:$0xf] }
  0x79   : > { %4772 = vmatmul.mubr.msk.f32.gmra.mxu1 %vm209_vm1, %v5807_v46  ;;  %4876 = vmatprep.mubr.msk.f32.mxu0 %vm209_vm1, %v5332_v7  ;;  %v6873_v7 = vld [vmem:[#allocation5_spill] sm:$0xff] }
  0x7a   : > { %4826 = vmatprep.mubr.msk.f32.mxu1 %vm209_vm1, %v5497_v41 }
  0x7c   : > { %4877 = vmatmul.mubr.msk.f32.vlgmr.msra.gmra.mxu0 %vm209_vm1, %v5353_v11  ;;  %v5968_v11 = vld [vmem:[%s5318_s3 + $0x189] sm:$0xff] }
  0x7d   : > { %4827 = vmatmul.mubr.msk.f32.vlgmr.msra.gmra.mxu1 %vm209_vm1, %v5519_v45  ;;  %4975 = vmatpush3.msk.msra.mxu0 %vm306_vm0, %v5512_v44  ;;  %6874 = vst [vmem:[#allocation5_spill] sm:$0xff] %v5968_v11  ;;  %v6892_v44 = vld [vmem:[#allocation23_spill] sm:$0xff]  ;;  %v6893_v45 = vld [vmem:[#allocation24_spill] sm:$0xff] }
  0x7e   : > { %4925 = vmatpush3.msk.msra.mxu1 %vm306_vm0, %v5507_v43  ;;  %4829 = vmatprep.mubr.msk.f32.mxu1 %vm209_vm1, %v5529_v47 }
  0x7f   : > { %4879 = vmatprep.mubr.msk.f32.mxu0 %vm209_vm1, %v5363_v13  ;;  %5024 = vmatprep.subr.msk.mxu1 %vm306_vm0, %v5827_v36 }
  0x80   : > { %5074 = vmatprep.subr.msk.mxu0 %vm306_vm0, %v5832_v10  ;;  %4880 = vmatmul.mubr.msk.f32.gmra.mxu0 %vm209_vm1, %v5381_v15 }
  0x81   : > { %4830 = vmatmul.mubr.msk.f32.gmra.mxu1 %vm209_vm1, %v5547_v49  ;;  %4882 = vmatprep.mubr.msk.f32.mxu0 %vm209_vm1, %v5387_v17 }
  0x82   : > { %4832 = vmatprep.mubr.msk.f32.mxu1 %vm209_vm1, %v5553_v51 }
  0x84   : > { %4883 = vmatmul.mubr.msk.f32.gmra.mxu0 %vm209_vm1, %v5401_v19 }
  0x85   : > { %4833 = vmatmul.mubr.msk.f32.gmra.mxu1 %vm209_vm1, %v5567_v53  ;;  %4885 = vmatprep.mubr.msk.f32.mxu0 %vm209_vm1, %v5407_v21 }
  0x86   : > { %4835 = vmatprep.mubr.msk.f32.mxu1 %vm209_vm1, %v5573_v55 }
  0x88   : > { %4886 = vmatmul.mubr.msk.f32.gmra.mxu0 %vm209_vm1, %v5421_v23 }
  0x89   : > { %4836 = vmatmul.mubr.msk.f32.gmra.mxu1 %vm209_vm1, %v5587_v57  ;;  %4888 = vmatprep.mubr.msk.f32.mxu0 %vm209_vm1, %v5427_v25 }
  0x8a   : > { %4838 = vmatprep.mubr.msk.f32.mxu1 %vm209_vm1, %v5593_v59 }
  0x8c   : > { %4889 = vmatmul.mubr.msk.f32.gmra.mxu0 %vm209_vm1, %v5441_v27 }
  0x8d   : > { %4839 = vmatmul.mubr.msk.f32.gmra.mxu1 %vm209_vm1, %v5607_v61  ;;  %4891 = vmatprep.mubr.msk.f32.mxu0 %vm209_vm1, %v5447_v29  ;;  %v6884_v29 = vld [vmem:[#allocation15_spill] sm:$0xff] }
  0x8e   : > { %4841 = vmatprep.mubr.msk.f32.mxu1 %vm209_vm1, %v5613_v63 }
  0x90   : > { %4892 = vmatmul.mubr.msk.f32.gmra.mxu0 %vm209_vm1, %v5461_v31  ;;  %v6886_v31 = vld [vmem:[#allocation17_spill] sm:$0xff] }
  0x91   : > { %4842 = vmatmul.mubr.msk.f32.gmra.mxu1 %vm209_vm1, %v5627_v1  ;;  %4894 = vmatprep.mubr.msk.f32.mxu0 %vm209_vm1, %v5467_v33  ;;  %v6888_v33 = vld [vmem:[#allocation19_spill] sm:$0xff] }
  0x92   : > { %4844 = vmatprep.mubr.msk.f32.mxu1 %vm209_vm1, %v5633_v3 }
  0x94   : > { %4895 = vmatmul.mubr.msk.f32.gmra.mxu0 %vm209_vm1, %v5481_v35  ;;  %v6890_v35 = vld [vmem:[#allocation21_spill] sm:$0xff] }
  0x95   : > { %4845 = vmatmul.mubr.msk.f32.gmra.mxu1 %vm209_vm1, %v5647_v9  ;;  %4897 = vmatprep.mubr.msk.f32.mxu0 %vm209_vm1, %v5322_v4  ;;  %v5951_v4 = vld [vmem:[%s5318_s3 + $0x180] sm:$0xff] }
  0x96   : > { %4847 = vmatprep.mubr.msk.f32.mxu1 %vm209_vm1, %v5653_v37 }
  0x98   : > { %4898 = vmatmul.mubr.msk.f32.gmra.mxu0 %vm209_vm1, %v5329_v6  ;;  %v5954_v6 = vld [vmem:[%s5318_s3 + $0x181] sm:$0xff] }
  0x99   : > { %4848 = vmatmul.mubr.msk.f32.gmra.mxu1 %vm209_vm1, %v5667_v39  ;;  %4900 = vmatprep.mubr.msk.f32.mxu0 %vm209_vm1, %v5335_v8  ;;  %6872 = vst [vmem:[#allocation36_spill] sm:$0xff] %v5954_v6  ;;  %v5965_v8 = vld [vmem:[%s5318_s3 + $0x188] sm:$0xff] }
  0x9a   : > { %4850 = vmatprep.mubr.msk.f32.mxu1 %vm209_vm1, %v5673_v5 }
  0x9c   : > { %4901 = vmatmul.mubr.msk.f32.gmra.mxu0 %vm209_vm1, %v5356_v12  ;;  %v6875_v12 = vld [vmem:[#allocation6_spill] sm:$0xff] }
  0x9d   : > { %4851 = vmatmul.mubr.msk.f32.gmra.mxu1 %vm209_vm1, %v5687_v38  ;;  %4903 = vmatprep.mubr.msk.f32.mxu0 %vm209_vm1, %v5366_v14  ;;  %v6876_v14 = vld [vmem:[#allocation7_spill] sm:$0xff] }
  0x9e   : > { %4853 = vmatprep.mubr.msk.f32.mxu1 %vm209_vm1, %v5693_v0 }
  0xa0   : > { %4904 = vmatmul.mubr.msk.f32.gmra.mxu0 %vm209_vm1, %v5384_v16  ;;  %v6877_v16 = vld [vmem:[#allocation8_spill] sm:$0xff] }
  0xa1   : > { %4854 = vmatmul.mubr.msk.f32.gmra.mxu1 %vm209_vm1, %v5707_v2  ;;  %4906 = vmatprep.mubr.msk.f32.mxu0 %vm209_vm1, %v5390_v18  ;;  %v6878_v18 = vld [vmem:[#allocation9_spill] sm:$0xff] }
  0xa2   : > { %4856 = vmatprep.mubr.msk.f32.mxu1 %vm209_vm1, %v5713_v60 }
  0xa4   : > { %4907 = vmatmul.mubr.msk.f32.gmra.mxu0 %vm209_vm1, %v5404_v20  ;;  %v6879_v20 = vld [vmem:[#allocation10_spill] sm:$0xff] }
  0xa5   : > { %4857 = vmatmul.mubr.msk.f32.gmra.mxu1 %vm209_vm1, %v5727_v62  ;;  %4909 = vmatprep.mubr.msk.f32.mxu0 %vm209_vm1, %v5410_v22  ;;  %v6880_v22 = vld [vmem:[#allocation11_spill] sm:$0xff] }
  0xa6   : > { %4859 = vmatprep.mubr.msk.f32.mxu1 %vm209_vm1, %v5733_v56 }
  0xa8   : > { %4910 = vmatmul.mubr.msk.f32.gmra.mxu0 %vm209_vm1, %v5424_v24  ;;  %v6881_v24 = vld [vmem:[#allocation12_spill] sm:$0xff] }
  0xa9   : > { %4860 = vmatmul.mubr.msk.f32.gmra.mxu1 %vm209_vm1, %v5747_v58  ;;  %4912 = vmatprep.mubr.msk.f32.mxu0 %vm209_vm1, %v5430_v26  ;;  %v6882_v26 = vld [vmem:[#allocation13_spill] sm:$0xff] }
  0xaa   : > { %4862 = vmatprep.mubr.msk.f32.mxu1 %vm209_vm1, %v5753_v52 }
  0xac   : > { %4913 = vmatmul.mubr.msk.f32.gmra.mxu0 %vm209_vm1, %v5444_v28  ;;  %v6883_v28 = vld [vmem:[#allocation14_spill] sm:$0xff] }
  0xad   : > { %4863 = vmatmul.mubr.msk.f32.gmra.mxu1 %vm209_vm1, %v5767_v54  ;;  %4915 = vmatprep.mubr.msk.f32.mxu0 %vm209_vm1, %v5450_v30  ;;  %v6885_v30 = vld [vmem:[#allocation16_spill] sm:$0xff] }
  0xae   : > { %4865 = vmatprep.mubr.msk.f32.mxu1 %vm209_vm1, %v5773_v48 }
  0xb0   : > { %4916 = vmatmul.mubr.msk.f32.gmra.mxu0 %vm209_vm1, %v5464_v32  ;;  %v6887_v32 = vld [vmem:[#allocation18_spill] sm:$0xff] }
  0xb1   : > { %4866 = vmatmul.mubr.msk.f32.gmra.mxu1 %vm209_vm1, %v5787_v50  ;;  %4918 = vmatprep.mubr.msk.f32.mxu0 %vm209_vm1, %v5470_v34  ;;  %v6889_v34 = vld [vmem:[#allocation20_spill] sm:$0xff] }
  0xb2   : > { %4868 = vmatprep.mubr.msk.f32.mxu1 %vm209_vm1, %v5793_v42 }
  0xb4   : > { %4919 = vmatmul.mubr.msk.f32.gmra.mxu0 %vm209_vm1, %v6873_v7 }
  0xb5   : > { %4869 = vmatmul.mubr.msk.f32.gmra.mxu1 %vm209_vm1, %v5807_v46  ;;  %4921 = vmatprep.mubr.msk.f32.mxu0 %vm209_vm1, %v5954_v6  ;;  %v4205_v6 = vld [vmem:[%s5318_s3 + $0x198] sm:$0xff] }
  0xb6   : > { %4871 = vmatprep.mubr.msk.f32.mxu1 %vm209_vm1, %v5951_v4 }
  0xb8   : > { %4922 = vmatmul.mubr.msk.f32.gmra.mxu0 %vm209_vm1, %v5968_v11  ;;  %v6143_v11 = vld [vmem:[%s5318_s3 + $0x182] sm:$0xff] }
  0xb9   : > { %4872 = vmatmul.mubr.msk.f32.gmra.mxu1 %vm209_vm1, %v5965_v8  ;;  %4976 = vmatprep.mubr.msk.f32.mxu0 %vm209_vm1, %v5529_v47  ;;  %6907 = vst [vmem:[#allocation10_spill] sm:$0xff] %v6143_v11 }
  0xba   : > { %4926 = vmatprep.mubr.msk.f32.mxu1 %vm209_vm1, %v6875_v12 }
  0xbc   : > { %4977 = vmatmul.mubr.msk.f32.vlgmr.msra.gmra.mxu0 %vm209_vm1, %v5547_v49 }
  0xbd   : > { %4927 = vmatmul.mubr.msk.f32.vlgmr.msra.gmra.mxu1 %vm209_vm1, %v6876_v14  ;;  %5075 = vmatpush3.msk.msra.mxu0 %vm306_vm0, %v5832_v10 }
  0xbe   : > { %5025 = vmatpush3.msk.msra.mxu1 %vm306_vm0, %v5827_v36  ;;  %4929 = vmatprep.mubr.msk.f32.mxu1 %vm209_vm1, %v6877_v16  ;;  %v6891_v36 = vld [vmem:[#allocation22_spill] sm:$0xff] }
  0xbf   : > { %4979 = vmatprep.mubr.msk.f32.mxu0 %vm209_vm1, %v5553_v51 }
  0xc0   : > { %4980 = vmatmul.mubr.msk.f32.gmra.mxu0 %vm209_vm1, %v5567_v53 }
  0xc1   : > { %4930 = vmatmul.mubr.msk.f32.gmra.mxu1 %vm209_vm1, %v6878_v18  ;;  %4982 = vmatprep.mubr.msk.f32.mxu0 %vm209_vm1, %v5573_v55  ;;  %v6894_v55 = vld [vmem:[#allocation25_spill] sm:$0xff] }
  0xc2   : > { %4932 = vmatprep.mubr.msk.f32.mxu1 %vm209_vm1, %v6879_v20 }
  0xc4   : > { %4983 = vmatmul.mubr.msk.f32.gmra.mxu0 %vm209_vm1, %v5587_v57  ;;  %v6895_v57 = vld [vmem:[#allocation26_spill] sm:$0xff] }
  0xc5   : > { %4933 = vmatmul.mubr.msk.f32.gmra.mxu1 %vm209_vm1, %v6880_v22  ;;  %4985 = vmatprep.mubr.msk.f32.mxu0 %vm209_vm1, %v5593_v59 }
  0xc6   : > { %4935 = vmatprep.mubr.msk.f32.mxu1 %vm209_vm1, %v6881_v24 }
  0xc8   : > { %4986 = vmatmul.mubr.msk.f32.gmra.mxu0 %vm209_vm1, %v5607_v61 }
  0xc9   : > { %4936 = vmatmul.mubr.msk.f32.gmra.mxu1 %vm209_vm1, %v6882_v26  ;;  %4988 = vmatprep.mubr.msk.f32.mxu0 %vm209_vm1, %v5613_v63 }
  0xca   : > { %4938 = vmatprep.mubr.msk.f32.mxu1 %vm209_vm1, %v6883_v28 }
  0xcc   : > { %4989 = vmatmul.mubr.msk.f32.gmra.mxu0 %vm209_vm1, %v5627_v1 }
  0xcd   : > { %4939 = vmatmul.mubr.msk.f32.gmra.mxu1 %vm209_vm1, %v6884_v29  ;;  %4991 = vmatprep.mubr.msk.f32.mxu0 %vm209_vm1, %v5633_v3 }
  0xce   : > { %4941 = vmatprep.mubr.msk.f32.mxu1 %vm209_vm1, %v6885_v30 }
  0xd0   : > { %4992 = vmatmul.mubr.msk.f32.gmra.mxu0 %vm209_vm1, %v5647_v9 }
  0xd1   : > { %4942 = vmatmul.mubr.msk.f32.gmra.mxu1 %vm209_vm1, %v6886_v31  ;;  %4994 = vmatprep.mubr.msk.f32.mxu0 %vm209_vm1, %v5653_v37 }
  0xd2   : > { %4944 = vmatprep.mubr.msk.f32.mxu1 %vm209_vm1, %v6887_v32 }
  0xd4   : > { %4995 = vmatmul.mubr.msk.f32.gmra.mxu0 %vm209_vm1, %v5667_v39 }
  0xd5   : > { %4945 = vmatmul.mubr.msk.f32.gmra.mxu1 %vm209_vm1, %v6888_v33  ;;  %4997 = vmatprep.mubr.msk.f32.mxu0 %vm209_vm1, %v5673_v5  ;;  %v6898_v5 = vld [vmem:[#allocation29_spill] sm:$0xff] }
  0xd6   : > { %4947 = vmatprep.mubr.msk.f32.mxu1 %vm209_vm1, %v6889_v34 }
  0xd8   : > { %4998 = vmatmul.mubr.msk.f32.gmra.mxu0 %vm209_vm1, %v5687_v38  ;;  %v6901_v38 = vld [vmem:[#allocation31_spill] sm:$0xff] }
  0xd9   : > { %4948 = vmatmul.mubr.msk.f32.gmra.mxu1 %vm209_vm1, %v6890_v35  ;;  %5000 = vmatprep.mubr.msk.f32.mxu0 %vm209_vm1, %v5693_v0  ;;  %v6896_v0 = vld [vmem:[#allocation27_spill] sm:$0xff] }
  0xda   : > { %4950 = vmatprep.mubr.msk.f32.mxu1 %vm209_vm1, %v6891_v36 }
  0xdc   : > { %v6046_v41 = vpop.f32.mrf.mxu0  ;;  %5001 = vmatmul.mubr.msk.f32.gmra.mxu0 %vm209_vm1, %v5707_v2 }
  0xdd   : > { %v6048_v43 = vpop.f32.mrf.mxu1  ;;  %4951 = vmatmul.mubr.msk.f32.gmra.mxu1 %vm209_vm1, %v6892_v44  ;;  %5003 = vmatprep.mubr.msk.f32.mxu0 %vm209_vm1, %v5713_v60 }
  0xde   : > { %4953 = vmatprep.mubr.msk.f32.mxu1 %vm209_vm1, %v6893_v45  ;;  %v6058_v47 = vpop.f32.mrf.mxu0 }
  0xdf   : > { %v6060_v49 = vpop.f32.mrf.mxu1 }
  0xe0   : > { %v6062_v51 = vpop.f32.mrf.mxu0  ;;  %5004 = vmatmul.mubr.msk.f32.gmra.mxu0 %vm209_vm1, %v5727_v62  ;;  %v6897_v62 = vld [vmem:[#allocation28_spill] sm:$0xff] }
  0xe1   : > { %v6064_v53 = vpop.f32.mrf.mxu1  ;;  %4954 = vmatmul.mubr.msk.f32.gmra.mxu1 %vm209_vm1, %v6894_v55  ;;  %5006 = vmatprep.mubr.msk.f32.mxu0 %vm209_vm1, %v5733_v56 }
  0xe2   : > { %4956 = vmatprep.mubr.msk.f32.mxu1 %vm209_vm1, %v6895_v57  ;;  %v6074_v59 = vpop.f32.mrf.mxu0 }
  0xe3   : > { %v6076_v60 = vpop.f32.mrf.mxu1 }
  0xe4   : > { %v6078_v61 = vpop.f32.mrf.mxu0  ;;  %5007 = vmatmul.mubr.msk.f32.gmra.mxu0 %vm209_vm1, %v5747_v58  ;;  %v6899_v58 = vld [vmem:[#allocation30_spill] sm:$0xff] }
  0xe5   : > { %v6080_v63 = vpop.f32.mrf.mxu1  ;;  %4957 = vmatmul.mubr.msk.f32.gmra.mxu1 %vm209_vm1, %v6896_v0  ;;  %5009 = vmatprep.mubr.msk.f32.mxu0 %vm209_vm1, %v5753_v52 }
  0xe6   : > { %4959 = vmatprep.mubr.msk.f32.mxu1 %vm209_vm1, %v6897_v62  ;;  %v6090_v56 = vpop.f32.mrf.mxu0 }
  0xe7   : > { %v6092_v1 = vpop.f32.mrf.mxu1 }
  0xe8   : > { %v6094_v2 = vpop.f32.mrf.mxu0  ;;  %5010 = vmatmul.mubr.msk.f32.gmra.mxu0 %vm209_vm1, %v5767_v54  ;;  %v6902_v54 = vld [vmem:[#allocation32_spill] sm:$0xff] }
  0xe9   : > { %v6096_v3 = vpop.f32.mrf.mxu1  ;;  %4960 = vmatmul.mubr.msk.f32.gmra.mxu1 %vm209_vm1, %v6898_v5  ;;  %5012 = vmatprep.mubr.msk.f32.mxu0 %vm209_vm1, %v5773_v48 }
  0xea   : > { %4962 = vmatprep.mubr.msk.f32.mxu1 %vm209_vm1, %v6899_v58  ;;  %v6106_v52 = vpop.f32.mrf.mxu0 }
  0xeb   : > { %v6108_v9 = vpop.f32.mrf.mxu1 }
  0xec   : > { %v6110_v10 = vpop.f32.mrf.mxu0  ;;  %5013 = vmatmul.mubr.msk.f32.gmra.mxu0 %vm209_vm1, %v5787_v50  ;;  %v6905_v50 = vld [vmem:[#allocation34_spill] sm:$0xff] }
  0xed   : > { %v6112_v37 = vpop.f32.mrf.mxu1  ;;  %4963 = vmatmul.mubr.msk.f32.gmra.mxu1 %vm209_vm1, %v6901_v38  ;;  %5015 = vmatprep.mubr.msk.f32.mxu0 %vm209_vm1, %v5793_v42 }
  0xee   : > { %6900 = vst [vmem:[#allocation6_spill] sm:$0xff] %v6112_v37  ;;  %4965 = vmatprep.mubr.msk.f32.mxu1 %vm209_vm1, %v6902_v54  ;;  %v6122_v48 = vpop.f32.mrf.mxu0  ;;  %v6909_v37 = vld [vmem:[#allocation35_spill] sm:$0xff] }
  0xef   : > { %v6124_v39 = vpop.f32.mrf.mxu1 }
  0xf0   : > { %6903 = vst [vmem:[#allocation7_spill] sm:$0xff] %v6124_v39  ;;  %v6126_v7 = vpop.f32.mrf.mxu0  ;;  %5016 = vmatmul.mubr.msk.f32.gmra.mxu0 %vm209_vm1, %v5807_v46  ;;  %v6158_v46 = vld [vmem:[%s5318_s3 + $0x18a] sm:$0xff] }
  0xf1   : > { %v6128_v12 = vpop.f32.mrf.mxu1  ;;  %4966 = vmatmul.mubr.msk.f32.gmra.mxu1 %vm209_vm1, %v5790_v40  ;;  %5018 = vmatprep.mubr.msk.f32.mxu0 %vm209_vm1, %v5951_v4  ;;  %6910 = vst [vmem:[#allocation12_spill] sm:$0xff] %v6158_v46  ;;  %v4206_v4 = vld [vmem:[%s5318_s3 + $0x1a0] sm:$0xff] }
  0xf2   : > { %6904 = vst [vmem:[#allocation8_spill] sm:$0xff] %v6128_v12  ;;  %4968 = vmatprep.mubr.msk.f32.mxu1 %vm209_vm1, %v6905_v50  ;;  %v6138_v42 = vpop.f32.mrf.mxu0 }
  0xf3   : > { %v6140_v14 = vpop.f32.mrf.mxu1 }
  0xf4   : > { %6906 = vst [vmem:[#allocation9_spill] sm:$0xff] %v6140_v14  ;;  %v6146_v12 = vpop.f32.mrf.mxu0  ;;  %5019 = vmatmul.mubr.msk.f32.gmra.mxu0 %vm209_vm1, %v5965_v8 }
  0xf5   : > { %v6148_v39 = vpop.f32.mrf.mxu1  ;;  %4969 = vmatmul.mubr.msk.f32.gmra.mxu1 %vm209_vm1, %v6909_v37  ;;  %5021 = vmatprep.mubr.msk.f32.mxu0 %vm209_vm1, %v4205_v6 }
  0xf6   : > { %6908 = vst [vmem:[#allocation11_spill] sm:$0xff] %v6148_v39  ;;  %4971 = vmatprep.mubr.msk.f32.mxu1 %vm209_vm1, %v6143_v11  ;;  %v6161_v50 = vpop.f32.mrf.mxu0 }
  0xf7   : > { %v6163_v14 = vpop.f32.mrf.mxu1 }
  0xf8   : > { %6911 = vst [vmem:[#allocation13_spill] sm:$0xff] %v6163_v14  ;;  %v6165_v40 = vpop.f32.mrf.mxu0  ;;  %5022 = vmatmul.mubr.msk.f32.gmra.mxu0 %vm209_vm1, %v4206_v4 }
  0xf9   : > { %v6167_v39 = vpop.f32.mrf.mxu1  ;;  %4972 = vmatmul.mubr.msk.f32.gmra.mxu1 %vm209_vm1, %v6158_v46  ;;  %5076 = vmatprep.mubr.msk.f32.mxu0 %vm209_vm1, %v6877_v16 }
  0xfa   : > { %6912 = vst [vmem:[#allocation14_spill] sm:$0xff] %v6167_v39  ;;  %5026 = vmatprep.mubr.msk.f32.mxu1 %vm209_vm1, %v5363_v13  ;;  %v6176_v6 = vpop.f32.mrf.mxu0 }
  0xfb   : > { %v6178_v8 = vpop.f32.mrf.mxu1 }
  0xfc   : > { %6913 = vst [vmem:[#allocation15_spill] sm:$0xff] %v6178_v8  ;;  %v4778_v14 = vpop.f32.mrf.mxu0  ;;  %5077 = vmatmul.mubr.msk.f32.vlgmr.msra.gmra.mxu0 %vm209_vm1, %v6878_v18 }
  0xfd   : > { %v4728_v37 = vpop.f32.mrf.mxu1  ;;  %5027 = vmatmul.mubr.msk.f32.vlgmr.msra.gmra.mxu1 %vm209_vm1, %v5381_v15  ;;  %5079 = vmatprep.mubr.msk.f32.mxu0 %vm209_vm1, %v6879_v20 }
  0xfe   : > { %v706_v4 = vadd.f32 %v4728_v37, %v6046_v41  ;;  %5029 = vmatprep.mubr.msk.f32.mxu1 %vm209_vm1, %v5387_v17  ;;  %v1058_v16 = vpop.f32.mrf.mxu0  ;;  %v4251_v37 = vld [vmem:[%s5318_s3 + $0xa9] sm:$0xff] }
  0xff   : > { %v700_v13 = vpop.f32.mrf.mxu1 }
 0x100   : > { %v6189_v39 = vadd.f32 %v4778_v14, %v706_v4  ;;  %v701_v8 = vadd.f32 %v700_v13, %v6058_v47  ;;  %v4781_v11 = vpop.f32.mrf.mxu0  ;;  %5080 = vmatmul.mubr.msk.f32.gmra.mxu0 %vm209_vm1, %v6880_v22 }
 0x101   : > { %v4731_v46 = vpop.f32.mrf.mxu1  ;;  %5030 = vmatmul.mubr.msk.f32.gmra.mxu1 %vm209_vm1, %v5401_v19  ;;  %5082 = vmatprep.mubr.msk.f32.mxu0 %vm209_vm1, %v6881_v24 }
 0x102   : > { %v6196_v15 = vadd.f32 %v1058_v16, %v701_v8  ;;  %v716_v17 = vadd.f32 %v4731_v46, %v6062_v51  ;;  %5032 = vmatprep.mubr.msk.f32.mxu1 %vm209_vm1, %v5407_v21  ;;  %v1068_v20 = vpop.f32.mrf.mxu0  ;;  %v4249_v51 = vld [vmem:[%s5318_s3 + $0x91] sm:$0xff] }
 0x103   : > { %v710_v18 = vpop.f32.mrf.mxu1  ;;  %v4252_v16 = vld [vmem:[%s5318_s3 + $0xb1] sm:$0xff] }
 0x104   : > { %v6203_v41 = vadd.f32 %v4781_v11, %v716_v17  ;;  %v711_v19 = vadd.f32 %v710_v18, %v6074_v59  ;;  %v4784_v14 = vpop.f32.mrf.mxu0  ;;  %5083 = vmatmul.mubr.msk.f32.gmra.mxu0 %vm209_vm1, %v6882_v26  ;;  %v4253_v18 = vld [vmem:[%s5318_s3 + $0xc1] sm:$0xff] }
 0x105   : > { %v4734_v47 = vpop.f32.mrf.mxu1  ;;  %5033 = vmatmul.mubr.msk.f32.gmra.mxu1 %vm209_vm1, %v5421_v23  ;;  %5085 = vmatprep.mubr.msk.f32.mxu0 %vm209_vm1, %v6883_v28 }
 0x106   : > { %v6210_v22 = vadd.f32 %v1068_v20, %v711_v19  ;;  %v726_v21 = vadd.f32 %v4734_v47, %v6078_v61  ;;  %5035 = vmatprep.mubr.msk.f32.mxu1 %vm209_vm1, %v5427_v25  ;;  %v1078_v24 = vpop.f32.mrf.mxu0  ;;  %v4250_v61 = vld [vmem:[%s5318_s3 + $0x99] sm:$0xff] }
 0x107   : > { %v720_v11 = vpop.f32.mrf.mxu1 }
 0x108   : > { %v6218_v59 = vadd.f32 %v4784_v14, %v726_v21  ;;  %v721_v23 = vadd.f32 %v720_v11, %v6090_v56  ;;  %v4787_v46 = vpop.f32.mrf.mxu0  ;;  %5086 = vmatmul.mubr.msk.f32.gmra.mxu0 %vm209_vm1, %v6884_v29  ;;  %v4254_v14 = vld [vmem:[%s5318_s3 + $0xc9] sm:$0xff]  ;;  %v4255_v11 = vld [vmem:[%s5318_s3 + $0xd9] sm:$0xff] }
 0x109   : > { %v4737_v26 = vpop.f32.mrf.mxu1  ;;  %5036 = vmatmul.mubr.msk.f32.gmra.mxu1 %vm209_vm1, %v5441_v27  ;;  %5088 = vmatprep.mubr.msk.f32.mxu0 %vm209_vm1, %v6885_v30 }
 0x10a   : > { %v6225_v25 = vadd.f32 %v1078_v24, %v721_v23  ;;  %v736_v28 = vadd.f32 %v4737_v26, %v6094_v2  ;;  %5038 = vmatprep.mubr.msk.f32.mxu1 %vm209_vm1, %v4249_v51  ;;  %v1088_v8 = vpop.f32.mrf.mxu0  ;;  %v4256_v26 = vld [vmem:[%s5318_s3 + $0xe1] sm:$0xff] }
 0x10b   : > { %v730_v56 = vpop.f32.mrf.mxu1 }
 0x10c   : > { %v6233_v4 = vadd.f32 %v4787_v46, %v736_v28  ;;  %v731_v27 = vadd.f32 %v730_v56, %v6106_v52  ;;  %v4790_v13 = vpop.f32.mrf.mxu0  ;;  %5089 = vmatmul.mubr.msk.f32.gmra.mxu0 %vm209_vm1, %v6886_v31  ;;  %v4257_v28 = vld [vmem:[%s5318_s3 + $0xf1] sm:$0xff] }
 0x10d   : > { %v4740_v29 = vpop.f32.mrf.mxu1  ;;  %5039 = vmatmul.mubr.msk.f32.gmra.mxu1 %vm209_vm1, %v4250_v61  ;;  %5091 = vmatprep.mubr.msk.f32.mxu0 %vm209_vm1, %v6887_v32 }
 0x10e   : > { %v6239_v2 = vadd.f32 %v1088_v8, %v731_v27  ;;  %v746_v30 = vadd.f32 %v4740_v29, %v6110_v10  ;;  %5041 = vmatprep.mubr.msk.f32.mxu1 %vm209_vm1, %v4251_v37  ;;  %v1098_v52 = vpop.f32.mrf.mxu0  ;;  %v4258_v37 = vld [vmem:[%s5318_s3 + $0xf9] sm:$0xff]  ;;  %v4259_v29 = vld [vmem:[%s5318_s3 + $0x109] sm:$0xff] }
 0x10f   : > { %v740_v17 = vpop.f32.mrf.mxu1 }
 0x110   : > { %v6247_v20 = vadd.f32 %v4790_v13, %v746_v30  ;;  %v741_v19 = vadd.f32 %v740_v17, %v6122_v48  ;;  %v4793_v47 = vpop.f32.mrf.mxu0  ;;  %5092 = vmatmul.mubr.msk.f32.gmra.mxu0 %vm209_vm1, %v6888_v33  ;;  %v4260_v17 = vld [vmem:[%s5318_s3 + $0x111] sm:$0xff] }
 0x111   : > { %v4743_v31 = vpop.f32.mrf.mxu1  ;;  %5042 = vmatmul.mubr.msk.f32.gmra.mxu1 %vm209_vm1, %v4252_v16  ;;  %5094 = vmatprep.mubr.msk.f32.mxu0 %vm209_vm1, %v6889_v34 }
 0x112   : > { %v6253_v10 = vadd.f32 %v1098_v52, %v741_v19  ;;  %v756_v32 = vadd.f32 %v4743_v31, %v6126_v7  ;;  %5044 = vmatprep.mubr.msk.f32.mxu1 %vm209_vm1, %v4253_v18  ;;  %v1108_v48 = vpop.f32.mrf.mxu0  ;;  %v4261_v18 = vld [vmem:[%s5318_s3 + $0x121] sm:$0xff] }
 0x113   : > { %v750_v21 = vpop.f32.mrf.mxu1 }
 0x114   : > { %v6261_v24 = vadd.f32 %v4793_v47, %v756_v32  ;;  %v751_v51 = vadd.f32 %v750_v21, %v6138_v42  ;;  %v4796_v23 = vpop.f32.mrf.mxu0  ;;  %5095 = vmatmul.mubr.msk.f32.gmra.mxu0 %vm209_vm1, %v6890_v35  ;;  %v4262_v32 = vld [vmem:[%s5318_s3 + $0x129] sm:$0xff]  ;;  %v4263_v21 = vld [vmem:[%s5318_s3 + $0x139] sm:$0xff] }
 0x115   : > { %v4746_v33 = vpop.f32.mrf.mxu1  ;;  %5045 = vmatmul.mubr.msk.f32.gmra.mxu1 %vm209_vm1, %v4254_v14  ;;  %5097 = vmatprep.mubr.msk.f32.mxu0 %vm209_vm1, %v6891_v36 }
 0x116   : > { %v6267_v7 = vadd.f32 %v1108_v48, %v751_v51  ;;  %v766_v34 = vadd.f32 %v4746_v33, %v6146_v12  ;;  %5047 = vmatprep.mubr.msk.f32.mxu1 %vm209_vm1, %v4255_v11  ;;  %v1118_v42 = vpop.f32.mrf.mxu0  ;;  %v4264_v33 = vld [vmem:[%s5318_s3 + $0x141] sm:$0xff] }
 0x117   : > { %v760_v46 = vpop.f32.mrf.mxu1 }
 0x118   : > { %v6275_v61 = vadd.f32 %v4796_v23, %v766_v34  ;;  %v761_v56 = vadd.f32 %v760_v46, %v6161_v50  ;;  %v4799_v8 = vpop.f32.mrf.mxu0  ;;  %5098 = vmatmul.mubr.msk.f32.gmra.mxu0 %vm209_vm1, %v6892_v44  ;;  %v4265_v34 = vld [vmem:[%s5318_s3 + $0x151] sm:$0xff] }
 0x119   : > { %v4749_v35 = vpop.f32.mrf.mxu1  ;;  %5048 = vmatmul.mubr.msk.f32.gmra.mxu1 %vm209_vm1, %v4256_v26  ;;  %5100 = vmatprep.mubr.msk.f32.mxu0 %vm209_vm1, %v6893_v45 }
 0x11a   : > { %v6281_v12 = vadd.f32 %v1118_v42, %v761_v56  ;;  %v776_v36 = vadd.f32 %v4749_v35, %v6165_v40  ;;  %5050 = vmatprep.mubr.msk.f32.mxu1 %vm209_vm1, %v4257_v28  ;;  %v1128_v50 = vpop.f32.mrf.mxu0  ;;  %v4266_v28 = vld [vmem:[%s5318_s3 + $0x159] sm:$0xff]  ;;  %v4267_v35 = vld [vmem:[%s5318_s3 + $0x169] sm:$0xff] }
 0x11b   : > { %v770_v27 = vpop.f32.mrf.mxu1 }
 0x11c   : > { %v6289_v13 = vadd.f32 %v4799_v8, %v776_v36  ;;  %v771_v30 = vadd.f32 %v770_v27, %v6176_v6  ;;  %v4802_v16 = vpop.f32.mrf.mxu0  ;;  %5101 = vmatmul.mubr.msk.f32.gmra.mxu0 %vm209_vm1, %v6894_v55  ;;  %v4333_v8 = vld [vmem:[%s5318_s3 + $0x16a] sm:$0xff] }
 0x11d   : > { %v4752_v44 = vpop.f32.mrf.mxu1  ;;  %5051 = vmatmul.mubr.msk.f32.gmra.mxu1 %vm209_vm1, %v4258_v37  ;;  %5103 = vmatprep.mubr.msk.f32.mxu0 %vm209_vm1, %v6895_v57 }
 0x11e   : > { %v6295_v40 = vadd.f32 %v1128_v50, %v771_v30  ;;  %v786_v45 = vadd.f32 %v4752_v44, %v6048_v43  ;;  %5053 = vmatprep.mubr.msk.f32.mxu1 %vm209_vm1, %v4259_v29  ;;  %v1138_v6 = vpop.f32.mrf.mxu0  ;;  %v4268_v30 = vld [vmem:[%s5318_s3 + $0x171] sm:$0xff] }
 0x11f   : > { %v780_v52 = vpop.f32.mrf.mxu1  ;;  %v4334_v44 = vld [vmem:[%s5318_s3 + $0x172] sm:$0xff] }
 0x120   : > { %v6303_v19 = vadd.f32 %v4802_v16, %v786_v45  ;;  %v781_v31 = vadd.f32 %v780_v52, %v6060_v49  ;;  %v4805_v47 = vpop.f32.mrf.mxu0  ;;  %5104 = vmatmul.mubr.msk.f32.gmra.mxu0 %vm209_vm1, %v6896_v0 }
 0x121   : > { %v4755_v55 = vpop.f32.mrf.mxu1  ;;  %5054 = vmatmul.mubr.msk.f32.gmra.mxu1 %vm209_vm1, %v4260_v17  ;;  %5106 = vmatprep.mubr.msk.f32.mxu0 %vm209_vm1, %v6897_v62  ;;  %v6916_v17 = vld [vmem:[#allocation7_spill] sm:$0xff] }
 0x122   : > { %v6309_v43 = vadd.f32 %v1138_v6, %v781_v31  ;;  %v796_v57 = vadd.f32 %v4755_v55, %v6064_v53  ;;  %5056 = vmatprep.mubr.msk.f32.mxu1 %vm209_vm1, %v4261_v18  ;;  %v1148_v49 = vpop.f32.mrf.mxu0  ;;  %v6917_v55 = vld [vmem:[#allocation8_spill] sm:$0xff] }
 0x123   : > { %v790_v14 = vpop.f32.mrf.mxu1 }
 0x124   : > { %v6317_v48 = vadd.f32 %v4805_v47, %v796_v57  ;;  %v791_v11 = vadd.f32 %v790_v14, %v6076_v60  ;;  %v4808_v51 = vpop.f32.mrf.mxu0  ;;  %5107 = vmatmul.mubr.msk.f32.gmra.mxu0 %vm209_vm1, %v6898_v5  ;;  %v6918_v57 = vld [vmem:[#allocation36_spill] sm:$0xff] }
 0x125   : > { %v4758_v0 = vpop.f32.mrf.mxu1  ;;  %5057 = vmatmul.mubr.msk.f32.gmra.mxu1 %vm209_vm1, %v4262_v32  ;;  %5109 = vmatprep.mubr.msk.f32.mxu0 %vm209_vm1, %v6899_v58  ;;  %v6919_v32 = vld [vmem:[#allocation10_spill] sm:$0xff] }
 0x126   : > { %v6323_v53 = vadd.f32 %v1148_v49, %v791_v11  ;;  %v806_v62 = vadd.f32 %v4758_v0, %v6080_v63  ;;  %5059 = vmatprep.mubr.msk.f32.mxu1 %vm209_vm1, %v4263_v21  ;;  %v1158_v60 = vpop.f32.mrf.mxu0  ;;  %v4271_v21 = vld [vmem:[%s5318_s3 + $0x199] sm:$0xff] }
 0x127   : > { %v800_v23 = vpop.f32.mrf.mxu1  ;;  %v4337_v11 = vld [vmem:[%s5318_s3 + $0x19a] sm:$0xff] }
 0x128   : > { %v6331_v26 = vadd.f32 %v4808_v51, %v806_v62  ;;  %v801_v5 = vadd.f32 %v800_v23, %v6092_v1  ;;  %v4811_v42 = vpop.f32.mrf.mxu0  ;;  %5110 = vmatmul.mubr.msk.f32.gmra.mxu0 %vm209_vm1, %v6901_v38  ;;  %v6920_v51 = vld [vmem:[#allocation9_spill] sm:$0xff] }
 0x129   : > { %v4761_v46 = vpop.f32.mrf.mxu1  ;;  %5060 = vmatmul.mubr.msk.f32.gmra.mxu1 %vm209_vm1, %v4264_v33  ;;  %5112 = vmatprep.mubr.msk.f32.mxu0 %vm209_vm1, %v6902_v54  ;;  %v6915_v54 = vld [vmem:[#allocation6_spill] sm:$0xff] }
 0x12a   : > { %v6337_v63 = vadd.f32 %v1158_v60, %v801_v5  ;;  %v816_v58 = vadd.f32 %v4761_v46, %v6096_v3  ;;  %5062 = vmatprep.mubr.msk.f32.mxu1 %vm209_vm1, %v4265_v34  ;;  %v1168_v56 = vpop.f32.mrf.mxu0  ;;  %v6914_v3 = vld [vmem:[#allocation33_spill] sm:$0xff]  ;;  %v6922_v34 = vld [vmem:[#allocation12_spill] sm:$0xff]  ;;  %v6923_v46 = vld [vmem:[#allocation11_spill] sm:$0xff] }
 0x12b   : > { %v810_v1 = vpop.f32.mrf.mxu1  ;;  %v6921_v60 = vld [vmem:[#allocation5_spill] sm:$0xff] }
 0x12c   : > { %v6346_v36 = vadd.f32 %v4811_v42, %v816_v58  ;;  %v811_v38 = vadd.f32 %v810_v1, %v6108_v9  ;;  %v4814_v27 = vpop.f32.mrf.mxu0  ;;  %5113 = vmatmul.mubr.msk.f32.gmra.mxu0 %vm209_vm1, %v6914_v3  ;;  %v4272_v58 = vld [vmem:[%s5318_s3 + $0x1a1] sm:$0xff] }
 0x12d   : > { %v4764_v37 = vpop.f32.mrf.mxu1  ;;  %5063 = vmatmul.mubr.msk.f32.gmra.mxu1 %vm209_vm1, %v4266_v28  ;;  %5115 = vmatprep.mubr.msk.f32.mxu0 %vm209_vm1, %v4333_v8  ;;  %v4338_v28 = vld [vmem:[%s5318_s3 + $0x1a2] sm:$0xff]  ;;  %s136_s3 = scalar_lea.vmem [#allocation2], %s3874_s29 }
 0x12e   : > { %v6352_v50 = vadd.f32 %v1168_v56, %v811_v38  ;;  %v826_v29 = vadd.f32 %v4764_v37, %v6915_v54  ;;  %5065 = vmatprep.mubr.msk.f32.mxu1 %vm209_vm1, %v4267_v35  ;;  %v1178_v16 = vpop.f32.mrf.mxu0  ;;  %v6924_v8 = vld [vmem:[#allocation13_spill] sm:$0xff]  ;;  %v6925_v54 = vld [vmem:[#allocation14_spill] sm:$0xff]  ;;  %s3811_s4 = sshll.u32 %s136_s3, 4  ;;  %s3812_s4 = int_to_ptr.vmem [resolvable:$true] %s3811_s4 }
 0x12f   : > { %v820_v9 = vpop.f32.mrf.mxu1  ;;  %s5169_s14 = scalar_lea.vmem %s3812_s4, 32  ;;  %p5176_p0 = scmp.lt.s32.totalorder %s3812_s4, %s5174_s16 }
 0x130   : > { %v6359_v45 = vadd.f32 %v4814_v27, %v826_v29  ;;  %v821_v52 = vadd.f32 %v820_v9, %v6916_v17  ;;  %v4817_v18 = vpop.f32.mrf.mxu0  ;;  %5116 = vmatmul.mubr.msk.f32.gmra.mxu0 %vm209_vm1, %v4334_v44  ;;  %p5170_p11 = scmp.ne.s32.totalorder %s3812_s4, %s5169_s14  ;;  %p5177_p1 = scmp.lt.s32.totalorder %s5175_s17, %s5169_s14 }
 0x131   : > { %v4767_v6 = vpop.f32.mrf.mxu1  ;;  %5066 = vmatmul.mubr.msk.f32.gmra.mxu1 %vm209_vm1, %v4268_v30  ;;  %5118 = vmatprep.mubr.msk.f32.mxu0 %vm209_vm1, %v6919_v32 }
 0x132   : > { %v6364_v31 = vadd.f32 %v1178_v16, %v821_v52  ;;  %v836_v47 = vadd.f32 %v4767_v6, %v6917_v55  ;;  %5068 = vmatprep.mubr.msk.f32.mxu1 %vm209_vm1, %v6918_v57  ;;  %v1188_v49 = vpop.f32.mrf.mxu0  ;;  %v6926_v16 = vld [vmem:[#allocation15_spill] sm:$0xff]  ;;  %p5171_p12 = pnand %p5170_p11, %p5288_p5  ;;  %p5178_p2 = por %p5177_p1, %p5176_p0 }
 0x133   : > { %v830_v14 = vpop.f32.mrf.mxu1 }
 0x134   : > { %v6373_v0 = vadd.f32 %v4817_v18, %v836_v47  ;;  %v831_v62 = vadd.f32 %v830_v14, %v6920_v51  ;;  %v4820_v23 = vpop.f32.mrf.mxu0  ;;  %5119 = vmatmul.mubr.msk.f32.gmra.mxu0 %vm209_vm1, %v6922_v34  ;;  %p5172_p13 = pneg %p5171_p12 }
 0x135   : > { %v4770_v33 = vpop.f32.mrf.mxu1  ;;  %5069 = vmatmul.mubr.msk.f32.gmra.mxu1 %vm209_vm1, %v6921_v60  ;;  %5121 = vmatprep.mubr.msk.f32.mxu0 %vm209_vm1, %v4337_v11 }
 0x136   : > { %v6380_v5 = vadd.f32 %v1188_v49, %v831_v62  ;;  %v846_v42 = vadd.f32 %v4770_v33, %v6923_v46  ;;  %5071 = vmatprep.mubr.msk.f32.mxu1 %vm209_vm1, %v4271_v21  ;;  %v1198_v56 = vpop.f32.mrf.mxu0  ;;  %p5179_p3 = pnand %p5178_p2, %p5172_p13 }
 0x137   : > { %v840_v1 = vpop.f32.mrf.mxu1 }
 0x138   : > { %v6387_v35 = vadd.f32 %v4820_v23, %v846_v42  ;;  %v841_v38 = vadd.f32 %v840_v1, %v6924_v8  ;;  %v4823_v27 = vpop.f32.mrf.mxu0  ;;  %5122 = vmatmul.mubr.msk.f32.gmra.mxu0 %vm209_vm1, %v4338_v28 }
 0x139   : > { %v4773_v37 = vpop.f32.mrf.mxu1  ;;  %5072 = vmatmul.mubr.msk.f32.gmra.mxu1 %vm209_vm1, %v4272_v58 }
 0x13a   : > { %v6392_v3 = vadd.f32 %v1198_v56, %v841_v38  ;;  %v856_v29 = vadd.f32 %v4773_v37, %v6925_v54  ;;  %v1208_v44 = vpop.f32.mrf.mxu0 }
 0x13b   : > { %v850_v30 = vpop.f32.mrf.mxu1 }
 0x13c   : > { %v6395_v9 = vadd.f32 %v4823_v27, %v856_v29  ;;  %v851_v17 = vadd.f32 %v850_v30, %v6926_v16  ;;  %v4878_v6 = vpop.f32.mrf.mxu0 }
 0x13d   : > { %v4828_v52 = vpop.f32.mrf.mxu1 }
 0x13e   : > { %v6398_v18 = vadd.f32 %v1208_v44, %v851_v17  ;;  %v1609_v55 = vadd.f32 %v4828_v52, %v6189_v39  ;;  %v1839_v57 = vpop.f32.mrf.mxu0 }
 0x13f   : > { %v1449_v47 = vpop.f32.mrf.mxu1 }
 0x140   : > { %v6401_v32 = vadd.f32 %v4878_v6, %v1609_v55  ;;  %v1608_v14 = vadd.f32 %v1449_v47, %v6196_v15  ;;  %v4881_v21 = vpop.f32.mrf.mxu0 }
 0x141   : > { %v4831_v49 = vpop.f32.mrf.mxu1 }
 0x142   : > { %v6404_v11 = vadd.f32 %v1839_v57, %v1608_v14  ;;  %v1611_v51 = vadd.f32 %v4831_v49, %v6203_v41  ;;  %v1849_v33 = vpop.f32.mrf.mxu0 }
 0x143   : > { %v1459_v62 = vpop.f32.mrf.mxu1 }
 0x144   : > { %v6407_v23 = vadd.f32 %v4881_v21, %v1611_v51  ;;  %v1610_v60 = vadd.f32 %v1459_v62, %v6210_v22  ;;  %v4884_v39 = vpop.f32.mrf.mxu0 }
 0x145   : > { %v4834_v34 = vpop.f32.mrf.mxu1 }
 0x146   : > { %v6410_v46 = vadd.f32 %v1849_v33, %v1610_v60  ;;  %v1613_v42 = vadd.f32 %v4834_v34, %v6218_v59  ;;  %v1859_v15 = vpop.f32.mrf.mxu0 }
 0x147   : > { %v1469_v58 = vpop.f32.mrf.mxu1 }
 0x148   : > { %v6413_v28 = vadd.f32 %v4884_v39, %v1613_v42  ;;  %v1612_v1 = vadd.f32 %v1469_v58, %v6225_v25  ;;  %v4887_v41 = vpop.f32.mrf.mxu0 }
 0x149   : > { %v4837_v56 = vpop.f32.mrf.mxu1 }
 0x14a   : > { %v6416_v8 = vadd.f32 %v1859_v15, %v1612_v1  ;;  %v1615_v38 = vadd.f32 %v4837_v56, %v6233_v4  ;;  %v1869_v22 = vpop.f32.mrf.mxu0 }
 0x14b   : > { %v1479_v37 = vpop.f32.mrf.mxu1 }
 0x14c   : > { %v6419_v27 = vadd.f32 %v4887_v41, %v1615_v38  ;;  %v1614_v54 = vadd.f32 %v1479_v37, %v6239_v2  ;;  %v4890_v59 = vpop.f32.mrf.mxu0 }
 0x14d   : > { %v4840_v29 = vpop.f32.mrf.mxu1 }
 0x14e   : > { %v6422_v30 = vadd.f32 %v1869_v22, %v1614_v54  ;;  %v1617_v44 = vadd.f32 %v4840_v29, %v6247_v20  ;;  %v1879_v25 = vpop.f32.mrf.mxu0 }
 0x14f   : > { %v1489_v16 = vpop.f32.mrf.mxu1 }
 0x150   : > { %v6425_v17 = vadd.f32 %v4890_v59, %v1617_v44  ;;  %v1616_v52 = vadd.f32 %v1489_v16, %v6253_v10  ;;  %v4893_v4 = vpop.f32.mrf.mxu0 }
 0x151   : > { %v4843_v6 = vpop.f32.mrf.mxu1 }
 0x152   : > { %v6428_v55 = vadd.f32 %v1879_v25, %v1616_v52  ;;  %v1619_v47 = vadd.f32 %v4843_v6, %v6261_v24  ;;  %v1889_v2 = vpop.f32.mrf.mxu0 }
 0x153   : > { %v1499_v57 = vpop.f32.mrf.mxu1 }
 0x154   : > { %v6431_v14 = vadd.f32 %v4893_v4, %v1619_v47  ;;  %v1618_v49 = vadd.f32 %v1499_v57, %v6267_v7  ;;  %v4896_v20 = vpop.f32.mrf.mxu0 }
 0x155   : > { %v4846_v21 = vpop.f32.mrf.mxu1 }
 0x156   : > { %v6434_v51 = vadd.f32 %v1889_v2, %v1618_v49  ;;  %v1621_v62 = vadd.f32 %v4846_v21, %v6275_v61  ;;  %v1899_v10 = vpop.f32.mrf.mxu0 }
 0x157   : > { %v1509_v33 = vpop.f32.mrf.mxu1 }
 0x158   : > { %v6437_v60 = vadd.f32 %v4896_v20, %v1621_v62  ;;  %v1620_v34 = vadd.f32 %v1509_v33, %v6281_v12  ;;  %v4899_v24 = vpop.f32.mrf.mxu0 }
 0x159   : > { %v4849_v39 = vpop.f32.mrf.mxu1 }
 0x15a   : > { %v6440_v42 = vadd.f32 %v1899_v10, %v1620_v34  ;;  %v1623_v58 = vadd.f32 %v4849_v39, %v6289_v13  ;;  %v1909_v7 = vpop.f32.mrf.mxu0 }
 0x15b   : > { %v1519_v15 = vpop.f32.mrf.mxu1 }
 0x15c   : > { %v6443_v1 = vadd.f32 %v4899_v24, %v1623_v58  ;;  %v1622_v56 = vadd.f32 %v1519_v15, %v6295_v40  ;;  %v4902_v61 = vpop.f32.mrf.mxu0 }
 0x15d   : > { %v4852_v41 = vpop.f32.mrf.mxu1 }
 0x15e   : > { %v6446_v38 = vadd.f32 %v1909_v7, %v1622_v56  ;;  %v1625_v37 = vadd.f32 %v4852_v41, %v6303_v19  ;;  %v1919_v12 = vpop.f32.mrf.mxu0 }
 0x15f   : > { %v1529_v22 = vpop.f32.mrf.mxu1 }
 0x160   : > { %v6449_v54 = vadd.f32 %v4902_v61, %v1625_v37  ;;  %v1624_v29 = vadd.f32 %v1529_v22, %v6309_v43  ;;  %v4905_v13 = vpop.f32.mrf.mxu0 }
 0x161   : > { %v4855_v59 = vpop.f32.mrf.mxu1 }
 0x162   : > { %v6452_v44 = vadd.f32 %v1919_v12, %v1624_v29  ;;  %v1627_v16 = vadd.f32 %v4855_v59, %v6317_v48  ;;  %v1929_v40 = vpop.f32.mrf.mxu0 }
 0x163   : > { %v1539_v25 = vpop.f32.mrf.mxu1 }
 0x164   : > { %v6455_v52 = vadd.f32 %v4905_v13, %v1627_v16  ;;  %v1626_v6 = vadd.f32 %v1539_v25, %v6323_v53  ;;  %v4908_v19 = vpop.f32.mrf.mxu0 }
 0x165   : > { %v4858_v4 = vpop.f32.mrf.mxu1 }
 0x166   : > { %v6458_v47 = vadd.f32 %v1929_v40, %v1626_v6  ;;  %v1629_v57 = vadd.f32 %v4858_v4, %v6331_v26  ;;  %v1939_v43 = vpop.f32.mrf.mxu0 }
 0x167   : > { %v1549_v2 = vpop.f32.mrf.mxu1 }
 0x168   : > { %v6461_v49 = vadd.f32 %v4908_v19, %v1629_v57  ;;  %v1628_v21 = vadd.f32 %v1549_v2, %v6337_v63  ;;  %v4911_v48 = vpop.f32.mrf.mxu0 }
 0x169   : > { %v4861_v20 = vpop.f32.mrf.mxu1 }
 0x16a   : > { %v6464_v62 = vadd.f32 %v1939_v43, %v1628_v21  ;;  %v1631_v33 = vadd.f32 %v4861_v20, %v6346_v36  ;;  %v1949_v53 = vpop.f32.mrf.mxu0 }
 0x16b   : > { %v1559_v10 = vpop.f32.mrf.mxu1 }
 0x16c   : > { %v6467_v34 = vadd.f32 %v4911_v48, %v1631_v33  ;;  %v1630_v39 = vadd.f32 %v1559_v10, %v6352_v50  ;;  %v4914_v26 = vpop.f32.mrf.mxu0 }
 0x16d   : > { %v4864_v24 = vpop.f32.mrf.mxu1 }
 0x16e   : > { %v6470_v58 = vadd.f32 %v1949_v53, %v1630_v39  ;;  %v1633_v15 = vadd.f32 %v4864_v24, %v6359_v45  ;;  %v1959_v63 = vpop.f32.mrf.mxu0 }
 0x16f   : > { %v1569_v7 = vpop.f32.mrf.mxu1 }
 0x170   : > { %v6473_v56 = vadd.f32 %v4914_v26, %v1633_v15  ;;  %v1632_v41 = vadd.f32 %v1569_v7, %v6364_v31  ;;  %v4917_v36 = vpop.f32.mrf.mxu0 }
 0x171   : > { %v4867_v61 = vpop.f32.mrf.mxu1 }
 0x172   : > { %v6476_v37 = vadd.f32 %v1959_v63, %v1632_v41  ;;  %v1635_v22 = vadd.f32 %v4867_v61, %v6373_v0  ;;  %v1969_v50 = vpop.f32.mrf.mxu0 }
 0x173   : > { %v1579_v12 = vpop.f32.mrf.mxu1 }
 0x174   : > { %6927 = vst [vmem:[#allocation16_spill] sm:$0xff] %v6476_v37  ;;  %v6479_v29 = vadd.f32 %v4917_v36, %v1635_v22  ;;  %v1634_v59 = vadd.f32 %v1579_v12, %v6380_v5  ;;  %v4920_v45 = vpop.f32.mrf.mxu0 }
 0x175   : > { %v4870_v13 = vpop.f32.mrf.mxu1 }
 0x176   : > { %v6482_v16 = vadd.f32 %v1969_v50, %v1634_v59  ;;  %v1637_v25 = vadd.f32 %v4870_v13, %v6387_v35  ;;  %v1979_v31 = vpop.f32.mrf.mxu0 }
 0x177   : > { %v1589_v40 = vpop.f32.mrf.mxu1 }
 0x178   : > { %6928 = vst [vmem:[#allocation17_spill] sm:$0xff] %v6482_v16  ;;  %v6485_v6 = vadd.f32 %v4920_v45, %v1637_v25  ;;  %v1636_v4 = vadd.f32 %v1589_v40, %v6392_v3  ;;  %v4923_v0 = vpop.f32.mrf.mxu0 }
 0x179   : > { %v4873_v19 = vpop.f32.mrf.mxu1 }
 0x17a   : > { %v6488_v57 = vadd.f32 %v1979_v31, %v1636_v4  ;;  %v1639_v2 = vadd.f32 %v4873_v19, %v6395_v9  ;;  %v1989_v5 = vpop.f32.mrf.mxu0 }
 0x17b   : > { %v1599_v43 = vpop.f32.mrf.mxu1 }
 0x17c   : > { %6929 = vst [vmem:[#allocation18_spill] sm:$0xff] %v6488_v57  ;;  %v6491_v21 = vadd.f32 %v4923_v0, %v1639_v2  ;;  %v1638_v20 = vadd.f32 %v1599_v43, %v6398_v18  ;;  %v4978_v35 = vpop.f32.mrf.mxu0 }
 0x17d   : > { %v4928_v48 = vpop.f32.mrf.mxu1 }
 0x17e   : > { %v6494_v33 = vadd.f32 %v1989_v5, %v1638_v20  ;;  %v2389_v10 = vadd.f32 %v4928_v48, %v6401_v32  ;;  %v6499_v3 = vpop.f32.mrf.mxu0 }
 0x17f   : > { %v6497_v53 = vpop.f32.mrf.mxu1 }
 0x180   : > { %6930 = vst [vmem:[#allocation19_spill] sm:$0xff] %v6494_v33  ;;  %v6501_v39 = vadd.f32 %v4978_v35, %v2389_v10  ;;  %v4981_v9 = vpop.f32.mrf.mxu0 }
 0x181   : > { %v4931_v24 = vpop.f32.mrf.mxu1 }
 0x182   : > { %v2391_v26 = vadd.f32 %v4931_v24, %v6407_v23  ;;  %v6506_v7 = vpop.f32.mrf.mxu0 }
 0x183   : > { %v6504_v15 = vpop.f32.mrf.mxu1 }
 0x184   : > { %v6508_v18 = vadd.f32 %v4981_v9, %v2391_v26  ;;  %v4984_v41 = vpop.f32.mrf.mxu0 }
 0x185   : > { %v4934_v63 = vpop.f32.mrf.mxu1 }
 0x186   : > { %v2393_v32 = vadd.f32 %v4934_v63, %v6413_v28  ;;  %v6513_v36 = vpop.f32.mrf.mxu0 }
 0x187   : > { %v6511_v61 = vpop.f32.mrf.mxu1 }
 0x188   : > { %v6515_v22 = vadd.f32 %v4984_v41, %v2393_v32  ;;  %v4987_v50 = vpop.f32.mrf.mxu0 }
 0x189   : > { %v4937_v12 = vpop.f32.mrf.mxu1 }
 0x18a   : > { %v2395_v23 = vadd.f32 %v4937_v12, %v6419_v27  ;;  %v6520_v13 = vpop.f32.mrf.mxu0 }
 0x18b   : > { %v6518_v59 = vpop.f32.mrf.mxu1 }
 0x18c   : > { %v6522_v45 = vadd.f32 %v4987_v50, %v2395_v23  ;;  %v4990_v40 = vpop.f32.mrf.mxu0 }
 0x18d   : > { %v4940_v25 = vpop.f32.mrf.mxu1 }
 0x18e   : > { %v2397_v28 = vadd.f32 %v4940_v25, %v6425_v17  ;;  %v6527_v4 = vpop.f32.mrf.mxu0 }
 0x18f   : > { %v6525_v31 = vpop.f32.mrf.mxu1 }
 0x190   : > { %v6529_v19 = vadd.f32 %v4990_v40, %v2397_v28  ;;  %v4993_v2 = vpop.f32.mrf.mxu0 }
 0x191   : > { %v4943_v0 = vpop.f32.mrf.mxu1 }
 0x192   : > { %v2399_v27 = vadd.f32 %v4943_v0, %v6431_v14  ;;  %v6534_v5 = vpop.f32.mrf.mxu0 }
 0x193   : > { %v6532_v43 = vpop.f32.mrf.mxu1 }
 0x194   : > { %v6536_v20 = vadd.f32 %v4993_v2, %v2399_v27  ;;  %v4996_v35 = vpop.f32.mrf.mxu0 }
 0x195   : > { %v4946_v48 = vpop.f32.mrf.mxu1 }
 0x196   : > { %v2401_v17 = vadd.f32 %v4946_v48, %v6437_v60  ;;  %v6541_v24 = vpop.f32.mrf.mxu0 }
 0x197   : > { %v6539_v10 = vpop.f32.mrf.mxu1 }
 0x198   : > { %v6543_v9 = vadd.f32 %v4996_v35, %v2401_v17  ;;  %v4999_v63 = vpop.f32.mrf.mxu0 }
 0x199   : > { %v4949_v26 = vpop.f32.mrf.mxu1 }
 0x19a   : > { %v2403_v14 = vadd.f32 %v4949_v26, %v6443_v1  ;;  %v6548_v32 = vpop.f32.mrf.mxu0 }
 0x19b   : > { %v6546_v41 = vpop.f32.mrf.mxu1 }
 0x19c   : > { %v6550_v12 = vadd.f32 %v4999_v63, %v2403_v14  ;;  %v5002_v23 = vpop.f32.mrf.mxu0 }
 0x19d   : > { %v4952_v50 = vpop.f32.mrf.mxu1 }
 0x19e   : > { %v2405_v60 = vadd.f32 %v4952_v50, %v6449_v54  ;;  %v6555_v40 = vpop.f32.mrf.mxu0 }
 0x19f   : > { %v6553_v25 = vpop.f32.mrf.mxu1 }
 0x1a0   : > { %v6557_v28 = vadd.f32 %v5002_v23, %v2405_v60  ;;  %v5005_v2 = vpop.f32.mrf.mxu0 }
 0x1a1   : > { %v4955_v0 = vpop.f32.mrf.mxu1 }
 0x1a2   : > { %v2407_v1 = vadd.f32 %v4955_v0, %v6455_v52  ;;  %v6562_v48 = vpop.f32.mrf.mxu0 }
 0x1a3   : > { %v6560_v27 = vpop.f32.mrf.mxu1 }
 0x1a4   : > { %v6564_v35 = vadd.f32 %v5005_v2, %v2407_v1  ;;  %v5008_v26 = vpop.f32.mrf.mxu0 }
 0x1a5   : > { %v4958_v17 = vpop.f32.mrf.mxu1 }
 0x1a6   : > { %v2409_v54 = vadd.f32 %v4958_v17, %v6461_v49  ;;  %v6569_v14 = vpop.f32.mrf.mxu0 }
 0x1a7   : > { %v6567_v63 = vpop.f32.mrf.mxu1 }
 0x1a8   : > { %v6571_v50 = vadd.f32 %v5008_v26, %v2409_v54  ;;  %v5011_v60 = vpop.f32.mrf.mxu0 }
 0x1a9   : > { %v4961_v23 = vpop.f32.mrf.mxu1 }
 0x1aa   : > { %6931 = vst [vmem:[#allocation20_spill] sm:$0xff] %v6571_v50  ;;  %v2411_v52 = vadd.f32 %v4961_v23, %v6467_v34  ;;  %v6576_v33 = vpop.f32.mrf.mxu0 }
 0x1ab   : > { %v6574_v0 = vpop.f32.mrf.mxu1  ;;  %6932 = vst [vmem:[#allocation21_spill] sm:$0xff] %v6576_v33 }
 0x1ac   : > { %v6578_v2 = vadd.f32 %v5011_v60, %v2411_v52  ;;  %v5014_v57 = vpop.f32.mrf.mxu0 }
 0x1ad   : > { %v4964_v1 = vpop.f32.mrf.mxu1 }
 0x1ae   : > { %6933 = vst [vmem:[#allocation22_spill] sm:$0xff] %v6578_v2  ;;  %v2413_v49 = vadd.f32 %v4964_v1, %v6473_v56  ;;  %v6583_v16 = vpop.f32.mrf.mxu0 }
 0x1af   : > { %v6581_v17 = vpop.f32.mrf.mxu1 }
 0x1b0   : > { %v6585_v26 = vadd.f32 %v5014_v57, %v2413_v49  ;;  %v5017_v50 = vpop.f32.mrf.mxu0 }
 0x1b1   : > { %v4967_v54 = vpop.f32.mrf.mxu1 }
 0x1b2   : > { %6934 = vst [vmem:[#allocation23_spill] sm:$0xff] %v6585_v26  ;;  %v2415_v34 = vadd.f32 %v4967_v54, %v6479_v29  ;;  %v6590_v37 = vpop.f32.mrf.mxu0  ;;  %v2388_v29 = vadd.f32 %v6497_v53, %v6404_v11  ;;  %v2392_v11 = vadd.f32 %v6511_v61, %v6416_v8 }
 0x1b3   : > { %v6588_v23 = vpop.f32.mrf.mxu1  ;;  %6935 = vst [vmem:[#allocation24_spill] sm:$0xff] %v6590_v37 }
 0x1b4   : > { %v6592_v60 = vadd.f32 %v5017_v50, %v2415_v34  ;;  %v5020_v2 = vpop.f32.mrf.mxu0 }
 0x1b5   : > { %v4970_v52 = vpop.f32.mrf.mxu1 }
 0x1b6   : > { %6936 = vst [vmem:[#allocation25_spill] sm:$0xff] %v6592_v60  ;;  %v2417_v56 = vadd.f32 %v4970_v52, %v6485_v6  ;;  %v6597_v33 = vpop.f32.mrf.mxu0  ;;  %v2779_v60 = vadd.f32 %v6499_v3, %v2388_v29 }
 0x1b7   : > { %v6595_v1 = vpop.f32.mrf.mxu1 }
 0x1b8   : > { %v6599_v57 = vadd.f32 %v5020_v2, %v2417_v56  ;;  %v5023_v26 = vpop.f32.mrf.mxu0  ;;  %v2390_v56 = vadd.f32 %v6504_v15, %v6410_v46 }
 0x1b9   : > { %v4973_v49 = vpop.f32.mrf.mxu1 }
 0x1ba   : > { %6937 = vst [vmem:[#allocation26_spill] sm:$0xff] %v6599_v57  ;;  %v2419_v54 = vadd.f32 %v4973_v49, %v6491_v21  ;;  %v6606_v50 = vpop.f32.mrf.mxu0  ;;  %v2781_v3 = vadd.f32 %v6506_v7, %v2390_v56 }
 0x1bb   : > { %v6604_v37 = vpop.f32.mrf.mxu1  ;;  %6939 = vst [vmem:[#allocation28_spill] sm:$0xff] %v6606_v50 }
 0x1bc   : > { %6938 = vst [vmem:[#allocation27_spill] sm:$0xff] %v6604_v37  ;;  %v6608_v34 = vadd.f32 %v5023_v26, %v2419_v54  ;;  %v5078_v52 = vpop.f32.mrf.mxu0 }
 0x1bd   : > { %v5028_v6 = vpop.f32.mrf.mxu1 }
 0x1be   : > { %6940 = vst [vmem:[#allocation29_spill] sm:$0xff] %v6608_v34  ;;  %v3170_v2 = vadd.f32 %v5028_v6, %v6501_v39  ;;  %v3400_v21 = vpop.f32.mrf.mxu0  ;;  %v2783_v39 = vadd.f32 %v6513_v36, %v2392_v11  ;;  %v2398_v36 = vadd.f32 %v6532_v43, %v6434_v51 }
 0x1bf   : > { %v3010_v53 = vpop.f32.mrf.mxu1 }
 0x1c0   : > { %v3560_v49 = vadd.f32 %v5078_v52, %v3170_v2  ;;  %v3169_v57 = vadd.f32 %v3010_v53, %v2779_v60  ;;  %v5081_v26 = vpop.f32.mrf.mxu0  ;;  %v2394_v60 = vadd.f32 %v6518_v59, %v6422_v30 }
 0x1c1   : > { %v5031_v50 = vpop.f32.mrf.mxu1 }
 0x1c2   : > { %v3662_v54 = vmul.f32 %v3560_v49, %v3560_v49  ;;  %v3559_v34 = vadd.f32 %v3400_v21, %v3169_v57  ;;  %v3172_v37 = vadd.f32 %v5031_v50, %v6508_v18  ;;  %v3410_v46 = vpop.f32.mrf.mxu0  ;;  %v3593_v15 = vsel %vm3591_vm2, %v3560_v49, 0.0 }
 0x1c3   : > { %v3020_v29 = vpop.f32.mrf.mxu1  ;;  %v2396_v57 = vadd.f32 %v6525_v31, %v6428_v55  ;;  %v2785_v55 = vadd.f32 %v6520_v13, %v2394_v60 }
 0x1c4   : > { %v3592_v8 = vsel %vm3591_vm2, %v3559_v34, 0.0  ;;  %v3661_v61 = vmul.f32 %v3559_v34, %v3559_v34  ;;  %v3562_v6 = vadd.f32 %v5081_v26, %v3172_v37  ;;  %v3171_v18 = vadd.f32 %v3020_v29, %v2781_v3  ;;  %v5084_v7 = vpop.f32.mrf.mxu0 }
 0x1c5   : > { %v3594_v52 = vadd.f32 %v3593_v15, %v3592_v8  ;;  %v5034_v50 = vpop.f32.mrf.mxu1  ;;  %v3694_v2 = vsel %vm3591_vm2, %v3662_v54, 0.0  ;;  %v2787_v43 = vadd.f32 %v6527_v4, %v2396_v57  ;;  %v2789_v54 = vadd.f32 %v6534_v5, %v2398_v36 }
 0x1c6   : > { %v3693_v56 = vsel %vm3591_vm2, %v3661_v61, 0.0  ;;  %v3174_v34 = vadd.f32 %v5034_v50, %v6515_v22  ;;  %v3561_v11 = vadd.f32 %v3410_v46, %v3171_v18  ;;  %v3420_v30 = vpop.f32.mrf.mxu0  ;;  %v3664_v59 = vmul.f32 %v3562_v6, %v3562_v6 }
 0x1c7   : > { %v3695_v37 = vadd.f32 %v3694_v2, %v3693_v56  ;;  %v3030_v53 = vpop.f32.mrf.mxu1  ;;  %v2400_v46 = vadd.f32 %v6539_v10, %v6440_v42  ;;  %v3597_v15 = vsel %vm3591_vm2, %v3562_v6, 0.0  ;;  %v2402_v10 = vadd.f32 %v6546_v41, %v6446_v38 }
 0x1c8   : > { %v3173_v21 = vadd.f32 %v3030_v53, %v2783_v39  ;;  %v3595_v31 = vsel %vm3591_vm2, %v3561_v11, 0.0  ;;  %v3663_v49 = vmul.f32 %v3561_v11, %v3561_v11  ;;  %v3564_v26 = vadd.f32 %v5084_v7, %v3174_v34  ;;  %v5087_v51 = vpop.f32.mrf.mxu0 }
 0x1c9   : > { %v5037_v3 = vpop.f32.mrf.mxu1  ;;  %v3596_v29 = vadd.f32 %v3595_v31, %v3594_v52  ;;  %v3698_v60 = vsel %vm3591_vm2, %v3664_v59, 0.0  ;;  %v2791_v56 = vadd.f32 %v6541_v24, %v2400_v46  ;;  %v2793_v24 = vadd.f32 %v6548_v32, %v2402_v10 }
 0x1ca   : > { %v3563_v22 = vadd.f32 %v3420_v30, %v3173_v21  ;;  %v3696_v39 = vsel %vm3591_vm2, %v3663_v49, 0.0  ;;  %v3176_v13 = vadd.f32 %v5037_v3, %v6522_v45  ;;  %v3430_v61 = vpop.f32.mrf.mxu0  ;;  %v3666_v5 = vmul.f32 %v3564_v26, %v3564_v26 }
 0x1cb   : > { %v3040_v8 = vpop.f32.mrf.mxu1  ;;  %v3697_v18 = vadd.f32 %v3696_v39, %v3695_v37  ;;  %v3598_v50 = vadd.f32 %v3597_v15, %v3596_v29  ;;  %v3601_v34 = vsel %vm3591_vm2, %v3564_v26, 0.0  ;;  %v2404_v26 = vadd.f32 %v6553_v25, %v6452_v44 }
 0x1cc   : > { %v3599_v4 = vsel %vm3591_vm2, %v3563_v22, 0.0  ;;  %v3665_v57 = vmul.f32 %v3563_v22, %v3563_v22  ;;  %v3566_v52 = vadd.f32 %v5087_v51, %v3176_v13  ;;  %v3175_v7 = vadd.f32 %v3040_v8, %v2785_v55  ;;  %v5090_v42 = vpop.f32.mrf.mxu0 }
 0x1cd   : > { %v5040_v36 = vpop.f32.mrf.mxu1  ;;  %v3600_v6 = vadd.f32 %v3599_v4, %v3598_v50  ;;  %v3699_v2 = vadd.f32 %v3698_v60, %v3697_v18  ;;  %v3702_v49 = vsel %vm3591_vm2, %v3666_v5, 0.0  ;;  %v2408_v10 = vadd.f32 %v6567_v63, %v6464_v62 }
 0x1ce   : > { %v3178_v45 = vadd.f32 %v5040_v36, %v6529_v19  ;;  %v3700_v37 = vsel %vm3591_vm2, %v3665_v57, 0.0  ;;  %v3565_v11 = vadd.f32 %v3430_v61, %v3175_v7  ;;  %v3440_v30 = vpop.f32.mrf.mxu0  ;;  %v3668_v21 = vmul.f32 %v3566_v52, %v3566_v52 }
 0x1cf   : > { %v3050_v53 = vpop.f32.mrf.mxu1  ;;  %v3701_v59 = vadd.f32 %v3700_v37, %v3699_v2  ;;  %v3602_v55 = vadd.f32 %v3601_v34, %v3600_v6  ;;  %v3605_v46 = vsel %vm3591_vm2, %v3566_v52, 0.0 }
 0x1d0   : > { %v3177_v31 = vadd.f32 %v3050_v53, %v2787_v43  ;;  %v3603_v38 = vsel %vm3591_vm2, %v3565_v11, 0.0  ;;  %v3667_v41 = vmul.f32 %v3565_v11, %v3565_v11  ;;  %v3568_v3 = vadd.f32 %v5090_v42, %v3178_v45  ;;  %v5093_v51 = vpop.f32.mrf.mxu0 }
 0x1d1   : > { %v5043_v19 = vpop.f32.mrf.mxu1  ;;  %v3604_v29 = vadd.f32 %v3603_v38, %v3602_v55  ;;  %v3703_v22 = vadd.f32 %v3702_v49, %v3701_v59  ;;  %v3706_v61 = vsel %vm3591_vm2, %v3668_v21, 0.0  ;;  %v2795_v49 = vadd.f32 %v6555_v40, %v2404_v26 }
 0x1d2   : > { %v3704_v15 = vsel %vm3591_vm2, %v3667_v41, 0.0  ;;  %v3567_v43 = vadd.f32 %v3440_v30, %v3177_v31  ;;  %v3180_v39 = vadd.f32 %v5043_v19, %v6536_v20  ;;  %v3450_v8 = vpop.f32.mrf.mxu0  ;;  %v3670_v32 = vmul.f32 %v3568_v3, %v3568_v3 }
 0x1d3   : > { %v3060_v13 = vpop.f32.mrf.mxu1  ;;  %v3705_v60 = vadd.f32 %v3704_v15, %v3703_v22  ;;  %v3606_v18 = vadd.f32 %v3605_v46, %v3604_v29  ;;  %v2406_v20 = vadd.f32 %v6560_v27, %v6458_v47  ;;  %v2799_v40 = vadd.f32 %v6569_v14, %v2408_v10 }
 0x1d4   : > { %v3179_v50 = vadd.f32 %v3060_v13, %v2789_v54  ;;  %v3607_v4 = vsel %vm3591_vm2, %v3567_v43, 0.0  ;;  %v3669_v44 = vmul.f32 %v3567_v43, %v3567_v43  ;;  %v3570_v25 = vadd.f32 %v5093_v51, %v3180_v39  ;;  %v5096_v57 = vpop.f32.mrf.mxu0 }
 0x1d5   : > { %v5046_v5 = vpop.f32.mrf.mxu1  ;;  %v3608_v52 = vadd.f32 %v3607_v4, %v3606_v18  ;;  %v3707_v7 = vadd.f32 %v3706_v61, %v3705_v60  ;;  %v3609_v54 = vsel %vm3591_vm2, %v3568_v3, 0.0  ;;  %v3710_v30 = vsel %vm3591_vm2, %v3670_v32, 0.0 }
 0x1d6   : > { %v3569_v36 = vadd.f32 %v3450_v8, %v3179_v50  ;;  %v3182_v42 = vadd.f32 %v5046_v5, %v6543_v9  ;;  %v3708_v6 = vsel %vm3591_vm2, %v3669_v44, 0.0  ;;  %v3460_v45 = vpop.f32.mrf.mxu0  ;;  %v3672_v9 = vmul.f32 %v3570_v25, %v3570_v25 }
 0x1d7   : > { %v3070_v2 = vpop.f32.mrf.mxu1  ;;  %v3709_v34 = vadd.f32 %v3708_v6, %v3707_v7  ;;  %v3610_v37 = vadd.f32 %v3609_v54, %v3608_v52  ;;  %v3613_v38 = vsel %vm3591_vm2, %v3570_v25, 0.0 }
 0x1d8   : > { %v3611_v11 = vsel %vm3591_vm2, %v3569_v36, 0.0  ;;  %v3671_v53 = vmul.f32 %v3569_v36, %v3569_v36  ;;  %v3572_v59 = vadd.f32 %v5096_v57, %v3182_v42  ;;  %v3181_v21 = vadd.f32 %v3070_v2, %v2791_v56  ;;  %v5099_v27 = vpop.f32.mrf.mxu0  ;;  %v6941_v2 = vld [vmem:[#allocation16_spill] sm:$0xff] }
 0x1d9   : > { %v5049_v47 = vpop.f32.mrf.mxu1  ;;  %v3612_v55 = vadd.f32 %v3611_v11, %v3610_v37  ;;  %v3711_v62 = vadd.f32 %v3710_v30, %v3709_v34  ;;  %v3714_v56 = vsel %vm3591_vm2, %v3672_v9, 0.0 }
 0x1da   : > { %v3712_v63 = vsel %vm3591_vm2, %v3671_v53, 0.0  ;;  %v3184_v31 = vadd.f32 %v5049_v47, %v6550_v12  ;;  %v3571_v41 = vadd.f32 %v3460_v45, %v3181_v21  ;;  %v3470_v19 = vpop.f32.mrf.mxu0  ;;  %v3674_v29 = vmul.f32 %v3572_v59, %v3572_v59 }
 0x1db   : > { %v3080_v3 = vpop.f32.mrf.mxu1  ;;  %v3713_v51 = vadd.f32 %v3712_v63, %v3711_v62  ;;  %v3614_v22 = vadd.f32 %v3613_v38, %v3612_v55  ;;  %v2797_v12 = vadd.f32 %v6562_v48, %v2406_v20  ;;  %v3617_v60 = vsel %vm3591_vm2, %v3572_v59, 0.0  ;;  %v6943_v38 = vld [vmem:[#allocation21_spill] sm:$0xff] }
 0x1dc   : > { %v3183_v46 = vadd.f32 %v3080_v3, %v2793_v24  ;;  %v3615_v15 = vsel %vm3591_vm2, %v3571_v41, 0.0  ;;  %v3673_v43 = vmul.f32 %v3571_v41, %v3571_v41  ;;  %v3574_v39 = vadd.f32 %v5099_v27, %v3184_v31  ;;  %v5102_v8 = vpop.f32.mrf.mxu0  ;;  %v6942_v31 = vld [vmem:[#allocation20_spill] sm:$0xff] }
 0x1dd   : > { %v5052_v13 = vpop.f32.mrf.mxu1  ;;  %v3616_v26 = vadd.f32 %v3615_v15, %v3614_v22  ;;  %v3715_v61 = vadd.f32 %v3714_v56, %v3713_v51  ;;  %v3718_v44 = vsel %vm3591_vm2, %v3674_v29, 0.0  ;;  %v2412_v45 = vadd.f32 %v6581_v17, %v6941_v2  ;;  %v6946_v2 = vld [vmem:[#allocation23_spill] sm:$0xff] }
 0x1de   : > { %v3716_v18 = vsel %vm3591_vm2, %v3673_v43, 0.0  ;;  %v3573_v50 = vadd.f32 %v3470_v19, %v3183_v46  ;;  %v3186_v24 = vadd.f32 %v5052_v13, %v6557_v28  ;;  %v3480_v4 = vpop.f32.mrf.mxu0  ;;  %v3676_v52 = vmul.f32 %v3574_v39, %v3574_v39 }
 0x1df   : > { %v3090_v32 = vpop.f32.mrf.mxu1  ;;  %v3717_v25 = vadd.f32 %v3716_v18, %v3715_v61  ;;  %v3618_v5 = vadd.f32 %v3617_v60, %v3616_v26  ;;  %v2410_v28 = vadd.f32 %v6574_v0, %v6470_v58  ;;  %v3621_v34 = vsel %vm3591_vm2, %v3574_v39, 0.0  ;;  %v6944_v60 = vld [vmem:[#allocation17_spill] sm:$0xff] }
 0x1e0   : > { %v3185_v57 = vadd.f32 %v3090_v32, %v2795_v49  ;;  %v3619_v48 = vsel %vm3591_vm2, %v3573_v50, 0.0  ;;  %v3675_v14 = vmul.f32 %v3573_v50, %v3573_v50  ;;  %v3576_v7 = vadd.f32 %v5102_v8, %v3186_v24  ;;  %v5105_v42 = vpop.f32.mrf.mxu0 }
 0x1e1   : > { %v5055_v36 = vpop.f32.mrf.mxu1  ;;  %v3620_v20 = vadd.f32 %v3619_v48, %v3618_v5  ;;  %v3719_v10 = vadd.f32 %v3718_v44, %v3717_v25  ;;  %v3722_v47 = vsel %vm3591_vm2, %v3676_v52, 0.0  ;;  %v2801_v41 = vadd.f32 %v6943_v38, %v2410_v28  ;;  %v6945_v44 = vld [vmem:[#allocation22_spill] sm:$0xff] }
 0x1e2   : > { %v3575_v54 = vadd.f32 %v3480_v4, %v3185_v57  ;;  %v3188_v6 = vadd.f32 %v5055_v36, %v6564_v35  ;;  %v3720_v37 = vsel %vm3591_vm2, %v3675_v14, 0.0  ;;  %v3490_v53 = vpop.f32.mrf.mxu0  ;;  %v3678_v35 = vmul.f32 %v3576_v7, %v3576_v7 }
 0x1e3   : > { %v3100_v11 = vpop.f32.mrf.mxu1  ;;  %v3721_v30 = vadd.f32 %v3720_v37, %v3719_v10  ;;  %v3622_v9 = vadd.f32 %v3621_v34, %v3620_v20  ;;  %v3625_v3 = vsel %vm3591_vm2, %v3576_v7, 0.0  ;;  %v2803_v61 = vadd.f32 %v6583_v16, %v2412_v45  ;;  %v6947_v34 = vld [vmem:[#allocation24_spill] sm:$0xff] }
 0x1e4   : > { %v3623_v59 = vsel %vm3591_vm2, %v3575_v54, 0.0  ;;  %v3677_v21 = vmul.f32 %v3575_v54, %v3575_v54  ;;  %v3578_v27 = vadd.f32 %v5105_v42, %v3188_v6  ;;  %v3187_v55 = vadd.f32 %v3100_v11, %v2797_v12  ;;  %v5108_v0 = vpop.f32.mrf.mxu0  ;;  %v6948_v11 = vld [vmem:[#allocation18_spill] sm:$0xff] }
 0x1e5   : > { %v5058_v58 = vpop.f32.mrf.mxu1  ;;  %v3624_v62 = vadd.f32 %v3623_v59, %v3622_v9  ;;  %v3723_v17 = vadd.f32 %v3722_v47, %v3721_v30  ;;  %v3726_v43 = vsel %vm3591_vm2, %v3678_v35, 0.0  ;;  %v2414_v18 = vadd.f32 %v6588_v23, %v6944_v60 }
 0x1e6   : > { %v3724_v63 = vsel %vm3591_vm2, %v3677_v21, 0.0  ;;  %v3190_v49 = vadd.f32 %v5058_v58, %v6942_v31  ;;  %v3577_v19 = vadd.f32 %v3490_v53, %v3187_v55  ;;  %v3500_v29 = vpop.f32.mrf.mxu0  ;;  %v3680_v46 = vmul.f32 %v3578_v27, %v3578_v27 }
 0x1e7   : > { %v3110_v51 = vpop.f32.mrf.mxu1  ;;  %v3725_v22 = vadd.f32 %v3724_v63, %v3723_v17  ;;  %v3626_v56 = vadd.f32 %v3625_v3, %v3624_v62  ;;  %v3629_v32 = vsel %vm3591_vm2, %v3578_v27, 0.0  ;;  %v2805_v37 = vadd.f32 %v6947_v34, %v2414_v18  ;;  %v6950_v18 = vld [vmem:[#allocation19_spill] sm:$0xff] }
 0x1e8   : > { %v3189_v15 = vadd.f32 %v3110_v51, %v2799_v40  ;;  %v3627_v39 = vsel %vm3591_vm2, %v3577_v19, 0.0  ;;  %v3679_v13 = vmul.f32 %v3577_v19, %v3577_v19  ;;  %v3580_v8 = vadd.f32 %v5108_v0, %v3190_v49  ;;  %v5111_v26 = vpop.f32.mrf.mxu0 }
 0x1e9   : > { %v5061_v12 = vpop.f32.mrf.mxu1  ;;  %v3628_v50 = vadd.f32 %v3627_v39, %v3626_v56  ;;  %v3727_v24 = vadd.f32 %v3726_v43, %v3725_v22  ;;  %v3730_v52 = vsel %vm3591_vm2, %v3680_v46, 0.0  ;;  %v2416_v53 = vadd.f32 %v6595_v1, %v6948_v11 }
 0x1ea   : > { %v3728_v4 = vsel %vm3591_vm2, %v3679_v13, 0.0  ;;  %v3579_v40 = vadd.f32 %v3500_v29, %v3189_v15  ;;  %v3192_v25 = vadd.f32 %v5061_v12, %v6945_v44  ;;  %v3510_v57 = vpop.f32.mrf.mxu0  ;;  %v3682_v16 = vmul.f32 %v3580_v8, %v3580_v8 }
 0x1eb   : > { %v3120_v5 = vpop.f32.mrf.mxu1  ;;  %v3729_v48 = vadd.f32 %v3728_v4, %v3727_v24  ;;  %v3630_v14 = vadd.f32 %v3629_v32, %v3628_v50  ;;  %v3633_v30 = vsel %vm3591_vm2, %v3580_v8, 0.0  ;;  %v2807_v60 = vadd.f32 %v6597_v33, %v2416_v53  ;;  %v6951_v50 = vld [vmem:[#allocation27_spill] sm:$0xff] }
 0x1ec   : > { %v3191_v7 = vadd.f32 %v3120_v5, %v2801_v41  ;;  %v3631_v36 = vsel %vm3591_vm2, %v3579_v40, 0.0  ;;  %v3681_v23 = vmul.f32 %v3579_v40, %v3579_v40  ;;  %v3582_v42 = vadd.f32 %v5111_v26, %v3192_v25  ;;  %v5114_v10 = vpop.f32.mrf.mxu0  ;;  %v6949_v41 = vld [vmem:[#allocation25_spill] sm:$0xff]  ;;  %v6952_v5 = vld [vmem:[#allocation26_spill] sm:$0xff] }
 0x1ed   : > { %v5064_v20 = vpop.f32.mrf.mxu1  ;;  %v3632_v54 = vadd.f32 %v3631_v36, %v3630_v14  ;;  %v3731_v6 = vadd.f32 %v3730_v52, %v3729_v48  ;;  %v3734_v58 = vsel %vm3591_vm2, %v3682_v16, 0.0  ;;  %v2418_v24 = vadd.f32 %v6951_v50, %v6950_v18 }
 0x1ee   : > { %v3581_v28 = vadd.f32 %v3510_v57, %v3191_v7  ;;  %v3194_v45 = vadd.f32 %v5064_v20, %v6946_v2  ;;  %v3732_v9 = vsel %vm3591_vm2, %v3681_v23, 0.0  ;;  %v3520_v21 = vpop.f32.mrf.mxu0  ;;  %v3684_v0 = vmul.f32 %v3582_v42, %v3582_v42  ;;  %v6953_v2 = vld [vmem:[#allocation29_spill] sm:$0xff] }
 0x1ef   : > { %v3130_v59 = vpop.f32.mrf.mxu1  ;;  %v3733_v47 = vadd.f32 %v3732_v9, %v3731_v6  ;;  %v3634_v35 = vadd.f32 %v3633_v30, %v3632_v54  ;;  %v3637_v19 = vsel %vm3591_vm2, %v3582_v42, 0.0 }
 0x1f0   : > { %v3635_v27 = vsel %vm3591_vm2, %v3581_v28, 0.0  ;;  %v3683_v55 = vmul.f32 %v3581_v28, %v3581_v28  ;;  %v3584_v62 = vadd.f32 %v5114_v10, %v3194_v45  ;;  %v3193_v17 = vadd.f32 %v3130_v59, %v2803_v61  ;;  %v5117_v31 = vpop.f32.mrf.mxu0 }
 0x1f1   : > { %v5067_v63 = vpop.f32.mrf.mxu1  ;;  %v3636_v49 = vadd.f32 %v3635_v27, %v3634_v35  ;;  %v3735_v1 = vadd.f32 %v3734_v58, %v3733_v47  ;;  %v3738_v39 = vsel %vm3591_vm2, %v3684_v0, 0.0 }
 0x1f2   : > { %v3736_v38 = vsel %vm3591_vm2, %v3683_v55, 0.0  ;;  %v3196_v3 = vadd.f32 %v5067_v63, %v6949_v41  ;;  %v3583_v51 = vadd.f32 %v3520_v21, %v3193_v17  ;;  %v3530_v22 = vpop.f32.mrf.mxu0  ;;  %v3686_v56 = vmul.f32 %v3584_v62, %v3584_v62 }
 0x1f3   : > { %v3140_v29 = vpop.f32.mrf.mxu1  ;;  %v3737_v46 = vadd.f32 %v3736_v38, %v3735_v1  ;;  %v3638_v15 = vadd.f32 %v3637_v19, %v3636_v49  ;;  %v3641_v40 = vsel %vm3591_vm2, %v3584_v62, 0.0 }
 0x1f4   : > { %v3195_v43 = vadd.f32 %v3140_v29, %v2805_v37  ;;  %v3639_v13 = vsel %vm3591_vm2, %v3583_v51, 0.0  ;;  %v3685_v8 = vmul.f32 %v3583_v51, %v3583_v51  ;;  %v3586_v12 = vadd.f32 %v5117_v31, %v3196_v3  ;;  %v5120_v61 = vpop.f32.mrf.mxu0  ;;  %v6954_v37 = vld [vmem:[#allocation28_spill] sm:$0xff] }
 0x1f5   : > { %v5070_v26 = vpop.f32.mrf.mxu1  ;;  %v3640_v32 = vadd.f32 %v3639_v13, %v3638_v15  ;;  %v3739_v4 = vadd.f32 %v3738_v39, %v3737_v46  ;;  %v3742_v14 = vsel %vm3591_vm2, %v3686_v56, 0.0  ;;  %v2809_v11 = vadd.f32 %v6954_v37, %v2418_v24 }
 0x1f6   : > { %v3740_v44 = vsel %vm3591_vm2, %v3685_v8, 0.0  ;;  %v3585_v25 = vadd.f32 %v3530_v22, %v3195_v43  ;;  %v3198_v57 = vadd.f32 %v5070_v26, %v6952_v5  ;;  %v3540_v48 = vpop.f32.mrf.mxu0  ;;  %v3688_v33 = vmul.f32 %v3586_v12, %v3586_v12 }
 0x1f7   : > { %v3150_v52 = vpop.f32.mrf.mxu1  ;;  %v3741_v7 = vadd.f32 %v3740_v44, %v3739_v4  ;;  %v3642_v16 = vadd.f32 %v3641_v40, %v3640_v32  ;;  %v3645_v53 = vsel %vm3591_vm2, %v3586_v12, 0.0 }
 0x1f8   : > { %v3197_v36 = vadd.f32 %v3150_v52, %v2807_v60  ;;  %v3643_v23 = vsel %vm3591_vm2, %v3585_v25, 0.0  ;;  %v3687_v42 = vmul.f32 %v3585_v25, %v3585_v25  ;;  %v3588_v20 = vadd.f32 %v5120_v61, %v3198_v57  ;;  %v5123_v34 = vpop.f32.mrf.mxu0 }
 0x1f9   : > { %v5073_v10 = vpop.f32.mrf.mxu1  ;;  %v3644_v54 = vadd.f32 %v3643_v23, %v3642_v16  ;;  %v3743_v6 = vadd.f32 %v3742_v14, %v3741_v7  ;;  %v3746_v27 = vsel %vm3591_vm2, %v3688_v33, 0.0 }
 0x1fa   : > { %v3587_v28 = vadd.f32 %v3540_v48, %v3197_v36  ;;  %v3200_v45 = vadd.f32 %v5073_v10, %v6953_v2  ;;  %v3744_v30 = vsel %vm3591_vm2, %v3687_v42, 0.0  ;;  %v3690_v55 = vmul.f32 %v3588_v20, %v3588_v20  ;;  %v3550_v31 = vpop.f32.mrf.mxu0 }
 0x1fb   : > { %v3160_v9 = vpop.f32.mrf.mxu1  ;;  %v3745_v59 = vadd.f32 %v3744_v30, %v3743_v6  ;;  %v3646_v21 = vadd.f32 %v3645_v53, %v3644_v54  ;;  %v3649_v49 = vsel %vm3591_vm2, %v3588_v20, 0.0 }
 0x1fc   : > { %v3647_v47 = vsel %vm3591_vm2, %v3587_v28, 0.0  ;;  %v3689_v35 = vmul.f32 %v3587_v28, %v3587_v28  ;;  %v3590_v58 = vadd.f32 %v5123_v34, %v3200_v45  ;;  %v3199_v0 = vadd.f32 %v3160_v9, %v2809_v11 }
 0x1fd   : > { %v3648_v62 = vadd.f32 %v3647_v47, %v3646_v21  ;;  %v3747_v17 = vadd.f32 %v3746_v27, %v3745_v59  ;;  %v3750_v19 = vsel %vm3591_vm2, %v3690_v55, 0.0 }
 0x1fe   : > { %v3748_v63 = vsel %vm3591_vm2, %v3689_v35, 0.0  ;;  %v3692_v1 = vmul.f32 %v3590_v58, %v3590_v58  ;;  %v3589_v38 = vadd.f32 %v3550_v31, %v3199_v0  ;;  %v3653_v15 = vsel %vm3591_vm2, %v3590_v58, 0.0 }
 0x1ff   : > { %v3749_v41 = vadd.f32 %v3748_v63, %v3747_v17  ;;  %v3650_v3 = vadd.f32 %v3649_v49, %v3648_v62 }
 0x200   : > { %v3754_v51 = vsel %vm3591_vm2, %v3692_v1, 0.0  ;;  %v3651_v29 = vsel %vm3591_vm2, %v3589_v38, 0.0  ;;  %v3691_v22 = vmul.f32 %v3589_v38, %v3589_v38 }
 0x201   : > { %v3652_v46 = vadd.f32 %v3651_v29, %v3650_v3  ;;  %v3751_v56 = vadd.f32 %v3750_v19, %v3749_v41 }
 0x202   : > { %v3752_v43 = vsel %vm3591_vm2, %v3691_v22, 0.0 }
 0x203   : > { %v3654_v39 = vadd.f32 %v3653_v15, %v3652_v46  ;;  %v3753_v13 = vadd.f32 %v3752_v43, %v3751_v56 }
 0x205   : > { %v3655_v8 = vrot.slane %v3654_v39, 4  ;;  %v3755_v12 = vadd.f32 %v3754_v51, %v3753_v13 }
 0x207   : > { %v3656_v26 = vadd.f32 %v3655_v8, %v3654_v39  ;;  %v3756_v61 = vrot.slane %v3755_v12, 4 }
 0x209   : > { %v3657_v60 = vrot.slane %v3656_v26, 2  ;;  %v3757_v18 = vadd.f32 %v3756_v61, %v3755_v12 }
 0x20b   : > { %v3658_v50 = vadd.f32 %v3657_v60, %v3656_v26  ;;  %v3758_v24 = vrot.slane %v3757_v18, 2 }
 0x20d   : > { %v3659_v32 = vrot.slane %v3658_v50, 1  ;;  %v3759_v4 = vadd.f32 %v3758_v24, %v3757_v18 }
 0x20f   : > { %v3660_v40 = vadd.f32 %v3659_v32, %v3658_v50  ;;  %v3760_v44 = vrot.slane %v3759_v4, 1 }
 0x211   : > { %3768 = vrot.lane.b32.xlu1 %v3660_v40, %s5231_s25  ;;  %3764 = vrot.lane.b32.xlu0 %v3660_v40, %s5232_s26  ;;  %v3761_v25 = vadd.f32 %v3760_v44, %v3759_v4 }
 0x215   : > { %3782 = vrot.lane.b32.xlu1 %v3761_v25, %s5231_s25  ;;  %3778 = vrot.lane.b32.xlu0 %v3761_v25, %s5232_s26 }
 0x219   : > { %3772 = vrot.lane.b32.xlu1 %v3660_v40, %s5233_s27  ;;  %3786 = vrot.lane.b32.xlu0 %v3761_v25, %s5233_s27 }
 0x283   : > { %v3769_v5 = vpop.permute.xlu1 %3768  ;;  %v3765_v57 = vpop.permute.xlu0 %3764 }
 0x284   : > { %v3767_v14 = vadd.f32 %v3765_v57, %v3660_v40 }
 0x286   : > { %v3771_v23 = vadd.f32 %v3769_v5, %v3767_v14 }
 0x287   : > { %v3783_v52 = vpop.permute.xlu1 %3782  ;;  %v3779_v48 = vpop.permute.xlu0 %3778 }
 0x288   : > { %v3781_v7 = vadd.f32 %v3779_v48, %v3761_v25 }
 0x28a   : > { %v3785_v16 = vadd.f32 %v3783_v52, %v3781_v7 }
 0x28b   : > { %v3773_v36 = vpop.permute.xlu1 %3772  ;;  %v3787_v33 = vpop.permute.xlu0 %3786 }
 0x28c   : > { %v3789_v42 = vadd.f32 %v3787_v33, %v3785_v16  ;;  %v3775_v20 = vadd.f32 %v3773_v36, %v3771_v23 }
 0x28e   : > { %v3791_v10 = vrot.slane %v3789_v42, 7 }
 0x290   : > { %v3794_v54 = vsel %vm3793_vm3, %v3775_v20, %v3791_v10 }
 0x291   : > { %3796 = vst.msk [vmem:[%s136_s3] sm:$0x3] %vm3795_vm4, %v3794_v54 }
 0x292   : > { %5182 = shalt.err (!%p5179_p3)
}
 0x293   : > { %s5183_s21 = scalar_lea.hbm %s6741_s7, 32  ;;  %s5187_s24 = scalar_lea.hbm %s6778_s2, 64 }
 0x294   : > { %p5184_p4 = scmp.ne.s32.totalorder %s6741_s7, %s5183_s21  ;;  %p5188_p9 = scmp.lt.s32.totalorder %s6741_s7, %s6778_s2 }
 0x295   : > { %p5189_p10 = scmp.lt.s32.totalorder %s5187_s24, %s5183_s21 }
 0x296   : > { %p5185_p7 = pnand %p5184_p4, %p5288_p5 }
 0x297   : > { %p5190_p11 = por %p5189_p10, %p5188_p9 }
 0x298   : > { %p5186_p8 = pneg %p5185_p7 }
 0x29a   : > { %p5191_p12 = pnand %p5190_p11, %p5186_p8 }
 0x29c   : > { %5194 = shalt.err (!%p5191_p12)
}
 0x29d   : > { %5127 = dma.vmem_to_hbm [thread:$0]  (%p5288_p5), %s3812_s4, 32, %s6741_s7, %s3798_s8  }
 0x29e PF: > { %p5133_p13 = scmp.ge.s32.totalorder %s5229_s12, 2  ;;  %s3823_s27 = sand.u32 1, %s5217_s9  }
 0x29f   : > { %s3824_s28 = scalar_lea.sflag [#allocation3], %s3823_s27 }
 0x2a0   : > { %p5130_p0 = pnand %p5133_p13, %p5292_p6 }
 0x2a2   : > { %p5131_p1 = pneg %p5130_p0 }
 0x2a4   : > { %5212 = dma.done.wait (%p5131_p1), %s3824_s28, 32  }
 0x2a5   : > { %5214 = vsyncadd (%p5131_p1), %s3824_s28, 4294967264  ;;  %p12_p2 = scmp.ge.s32.totalorder %s5275_s15, 4   ;;  %s6955_s9 = smov %s5221_s10 }
 0x2a6   : > { %s6956_s10 = smov %s5225_s11  ;;  %s6957_s11 = smov %s5286_s18 }
 0x2a7   : > { %s6958_s12 = smov %s5275_s15  ;;  %14 = sbr.rel (!%p12_p2) target bundleno = 3 (0x3), region = 73 }
 0x2ac   :  { %3829 = vsyncpa [#allocation3], 1 }
 0x2ad   :  { %3831 = vsyncpa [#allocation3 + $0x1], 1 }

</bundles_post_ra>
